<compile_context>
chip_gen: v5e
topology: v5e:2x2
jax: 0.10.0
libtpu: 0.0.40
codegen_flags: <defaults>
</compile_context>

<pallas_src>
import functools
import math

import numpy as np
import jax
import jax.numpy as jnp
from jax import lax
from jax.experimental import pallas as pl
from jax.experimental.pallas import tpu as pltpu

LN_EPS = 1e-5                       # PyTorch nn.LayerNorm default
VMEM_LIMIT_BYTES = 48 * 1024 * 1024  # > 16/32 MiB scoped defaults, < v7x 64 MiB


# ----------------------------------------------------------------------------
# Helpers
# ----------------------------------------------------------------------------
def _layer_norm(y, gamma, beta):
    """LayerNorm over the last axis, f32 statistics."""
    mean = jnp.mean(y, axis=-1, keepdims=True)
    var = jnp.mean((y - mean) ** 2, axis=-1, keepdims=True)
    return (y - mean) * lax.rsqrt(var + LN_EPS) * gamma + beta


def _pick_row_tile(s, preferred):
    """Largest divisor of s that is <= preferred and a multiple of 16
    (bf16-friendly sublane count), falling back to a multiple of 8, else s."""
    if s <= preferred:
        return s
    for step in (16, 8):
        t = (preferred // step) * step
        while t >= step:
            if s % t == 0:
                return t
            t -= step
    return s


def _pick_vocab_tile(v, preferred=2048):
    """Largest divisor of v that is a multiple of 128 and <= preferred."""
    if v <= preferred:
        return v
    t = (preferred // 128) * 128
    while t >= 128:
        if v % t == 0:
            return t
        t -= 128
    return v


def _const2d(shape):
    """BlockSpec for a weight/bias that is constant across a 2-D grid.
    The block index never changes, so Pallas fetches it once and skips the
    re-DMA on every subsequent grid step."""
    # TODO(synk): single-buffer these constant blocks (pipeline_mode=pl.Buffered(1))
    #             once verified on the target jax version — halves weight VMEM on v7x.
    return pl.BlockSpec(shape, lambda b, i: (0, 0))


# ----------------------------------------------------------------------------
# Kernels
# ----------------------------------------------------------------------------
def _mha_addnorm_kernel(xq_ref, xkv_ref, mask_ref,
                        wq_ref, bq_ref, wkv_ref, bkv_ref, wo_ref, bo_ref,
                        gamma_ref, beta_ref, out_ref, k_scr, v_scr, *, num_heads):
    """out = LayerNorm(xq + MHA(xq, xkv, xkv, mask)) for one (batch, q-tile).

    K/V are projected once per batch (i == 0) into head-major bf16 VMEM
    scratch and reused for every q-tile of that batch (q-tile axis is
    'arbitrary')."""
    TS, D = xq_ref.shape[1], xq_ref.shape[2]
    Skv = xkv_ref.shape[1]
    dh = D // num_heads
    scale = 1.0 / math.sqrt(dh)

    # --- K/V projection hoisted out of the q-tile axis: once per (layer, batch)
    @pl.when(pl.program_id(1) == 0)
    def _():
        xkv = xkv_ref[0]                                        # (Skv, D) bf16
        kv = jnp.dot(xkv, wkv_ref[...],
                     preferred_element_type=jnp.float32) + bkv_ref[...]
        k = kv[:, :D]
        v = kv[:, D:]
        # Head-major relayout happens once per batch, not once per q-tile.
        k_scr[...] = jnp.transpose(k.reshape(Skv, num_heads, dh),
                                   (1, 0, 2)).astype(jnp.bfloat16)
        v_scr[...] = jnp.transpose(v.reshape(Skv, num_heads, dh),
                                   (1, 0, 2)).astype(jnp.bfloat16)

    xq = xq_ref[0]                                              # (TS, D) bf16
    q = jnp.dot(xq, wq_ref[...],
                preferred_element_type=jnp.float32) + bq_ref[...]
    q = q * scale          # fold 1/sqrt(dh) into q (TS*D elems, not H*TS*Skv)
    # TODO(synk): project directly into head-major (dot_general batch dims on
    #             axis 1) to also drop the q/o relayouts once Mosaic supports
    #             non-leading batch dims cleanly.
    q3 = jnp.transpose(q.reshape(TS, num_heads, dh), (1, 0, 2)).astype(jnp.bfloat16)

    s = jnp.einsum('hqd,hkd->hqk', q3, k_scr[...],
                   preferred_element_type=jnp.float32)          # (H, TS, Skv)
    s = s + mask_ref[...].astype(jnp.float32)[None, :, :]
    s = s - jnp.max(s, axis=-1, keepdims=True)
    p = jnp.exp(s)
    p = p * pl.reciprocal(jnp.sum(p, axis=-1, keepdims=True), approx=True)

    o = jnp.einsum('hqk,hkd->hqd', p.astype(jnp.bfloat16), v_scr[...],
                   preferred_element_type=jnp.float32)          # (H, TS, dh)
    attn = jnp.transpose(o, (1, 0, 2)).reshape(TS, D)
    attn = jnp.dot(attn.astype(jnp.bfloat16), wo_ref[...],
                   preferred_element_type=jnp.float32) + bo_ref[...]

    y = xq.astype(jnp.float32) + attn                           # residual in f32
    out_ref[0] = _layer_norm(y, gamma_ref[...], beta_ref[...]).astype(out_ref.dtype)


def _ffn_core(x, w1_ref, b1_ref, w2_ref, b2_ref, g_ref, b_ref):
    xb = x.astype(jnp.bfloat16)
    h = jnp.dot(xb, w1_ref[...], preferred_element_type=jnp.float32) + b1_ref[...]
    h = jnp.maximum(h, 0.0)
    y = jnp.dot(h.astype(jnp.bfloat16), w2_ref[...],
                preferred_element_type=jnp.float32) + b2_ref[...]
    return _layer_norm(x.astype(jnp.float32) + y, g_ref[...], b_ref[...])


def _ffn_addnorm_kernel(x_ref, w1_ref, b1_ref, w2_ref, b2_ref,
                        g3_ref, b3_ref, out_ref):
    """out = LayerNorm3(x + FFN(x)) for one (batch, seq-tile)."""
    out_ref[0] = _ffn_core(x_ref[0], w1_ref, b1_ref, w2_ref, b2_ref,
                           g3_ref, b3_ref).astype(out_ref.dtype)


def _prenorm_ffn_addnorm_kernel(x_ref, g2_ref, b2n_ref,
                                w1_ref, b1_ref, w2_ref, b2_ref,
                                g3_ref, b3_ref, out_ref):
    """enc_out=None path, matches the reference exactly:
       xn = LayerNorm2(x); out = LayerNorm3(xn + FFN(xn))."""
    xn = _layer_norm(x_ref[0].astype(jnp.float32), g2_ref[...], b2n_ref[...])
    out_ref[0] = _ffn_core(xn, w1_ref, b1_ref, w2_ref, b2_ref,
                           g3_ref, b3_ref).astype(out_ref.dtype)


def _linear_kernel(x_ref, w_ref, b_ref, out_ref):
    out_ref[...] = (jnp.dot(x_ref[...], w_ref[...],
                            preferred_element_type=jnp.float32)
                    + b_ref[...]).astype(out_ref.dtype)


# ----------------------------------------------------------------------------
# Pallas wrappers
# ----------------------------------------------------------------------------
def mha_addnorm(xq, xkv, mask_add, ap, np_, num_heads):
    B, S, D = xq.shape
    Skv = xkv.shape[1]
    dh = D // num_heads
    TS = _pick_row_tile(S, 128)   # 128 keeps the full-KV + weight budget inside v7x's 64 MiB
    # TODO(synk): for very long Skv, add an "arbitrary" KV grid axis with an
    #             online-softmax accumulator (flash-style) instead of full-KV scratch.
    kernel = functools.partial(_mha_addnorm_kernel, num_heads=num_heads)
    return pl.pallas_call(
        kernel,
        out_shape=jax.ShapeDtypeStruct((B, S, D), jnp.bfloat16),
        grid=(B, S // TS),
        in_specs=[
            pl.BlockSpec((1, TS, D), lambda b, i: (b, i, 0)),    # q rows (tile)
            pl.BlockSpec((1, Skv, D), lambda b, i: (b, 0, 0)),   # kv rows: index only
                                                                 # changes with b -> one DMA per batch
            pl.BlockSpec((TS, Skv), lambda b, i: (i, 0)),        # additive mask (bf16)
            _const2d((D, D)), _const2d((1, D)),                  # wq, bq
            _const2d((D, 2 * D)), _const2d((1, 2 * D)),          # wkv, bkv (packed)
            _const2d((D, D)), _const2d((1, D)),                  # wo, bo
            _const2d((1, D)), _const2d((1, D)),                  # gamma, beta
        ],
        out_specs=pl.BlockSpec((1, TS, D), lambda b, i: (b, i, 0)),
        scratch_shapes=[pltpu.VMEM((num_heads, Skv, dh), jnp.bfloat16),   # K (head-major)
                        pltpu.VMEM((num_heads, Skv, dh), jnp.bfloat16)],  # V (head-major)
        # q-tile axis must be "arbitrary": K/V scratch is carried across it.
        compiler_params=pltpu.CompilerParams(
            dimension_semantics=("parallel", "arbitrary"),
            vmem_limit_bytes=VMEM_LIMIT_BYTES),
    )(xq, xkv, mask_add, ap["wq"], ap["bq"], ap["wkv"], ap["bkv"],
      ap["wo"], ap["bo"], np_["gamma"], np_["beta"])


def ffn_addnorm(x, fp, norm3, pre_norm=None):
    B, S, D = x.shape
    F = fp["w1"].shape[1]
    TS = _pick_row_tile(S, 128)
    grid = (B, S // TS)
    x_spec = pl.BlockSpec((1, TS, D), lambda b, i: (b, i, 0))
    out_spec = pl.BlockSpec((1, TS, D), lambda b, i: (b, i, 0))
    w_specs = [_const2d((D, F)), _const2d((1, F)),
               _const2d((F, D)), _const2d((1, D)),
               _const2d((1, D)), _const2d((1, D))]
    cp = pltpu.CompilerParams(dimension_semantics=("parallel", "parallel"),
                              vmem_limit_bytes=VMEM_LIMIT_BYTES)
    if pre_norm is None:
        return pl.pallas_call(
            _ffn_addnorm_kernel,
            out_shape=jax.ShapeDtypeStruct((B, S, D), jnp.bfloat16),
            grid=grid,
            in_specs=[x_spec] + w_specs,
            out_specs=out_spec,
            compiler_params=cp,
        )(x, fp["w1"], fp["b1"], fp["w2"], fp["b2"],
          norm3["gamma"], norm3["beta"])
    # enc_out=None path: norm2 fused into this kernel (no standalone LayerNorm call)
    return pl.pallas_call(
        _prenorm_ffn_addnorm_kernel,
        out_shape=jax.ShapeDtypeStruct((B, S, D), jnp.bfloat16),
        grid=grid,
        in_specs=[x_spec, _const2d((1, D)), _const2d((1, D))] + w_specs,
        out_specs=out_spec,
        compiler_params=cp,
    )(x, pre_norm["gamma"], pre_norm["beta"],
      fp["w1"], fp["b1"], fp["w2"], fp["b2"], norm3["gamma"], norm3["beta"])


def linear(x, w, b):
    """Vocab projection.  Activations are flattened to (B*S, D) and the grid
    is (vocab-tiles OUTER, row-tiles inner): the (D, TN) weight tile's block
    index only changes on the outer axis, so each weight tile is DMA'd exactly
    once (the weight dominates HBM traffic for this matmul)."""
    B, S, D = x.shape
    V = w.shape[1]
    M = B * S
    x2 = x.reshape(M, D)
    TN = _pick_vocab_tile(V, preferred=2048)   # big lane-dense tiles, few grid steps
    TM = _pick_row_tile(M, 256)
    out = pl.pallas_call(
        _linear_kernel,
        out_shape=jax.ShapeDtypeStruct((M, V), jnp.float32),
        grid=(V // TN, M // TM),               # vocab axis OUTER
        in_specs=[pl.BlockSpec((TM, D), lambda v, m: (m, 0)),
                  pl.BlockSpec((D, TN), lambda v, m: (0, v)),
                  pl.BlockSpec((1, TN), lambda v, m: (0, v))],
        out_specs=pl.BlockSpec((TM, TN), lambda v, m: (m, v)),
        compiler_params=pltpu.CompilerParams(
            dimension_semantics=("parallel", "parallel"),
            vmem_limit_bytes=VMEM_LIMIT_BYTES),
    )(x2, w, b)
    return out.reshape(B, S, V)


# ----------------------------------------------------------------------------
# Parameter init + forward (mirrors Decoder.forward)
# ----------------------------------------------------------------------------
def _sinusoidal_pe(max_len, d_model):
    pos = np.arange(max_len, dtype=np.float32)[:, None]
    div = np.exp(np.arange(0, d_model, 2, dtype=np.float32)
                 * (-math.log(10000.0) / d_model))
    pe = np.zeros((max_len, d_model), dtype=np.float32)
    pe[:, 0::2] = np.sin(pos * div)
    pe[:, 1::2] = np.cos(pos * div)
    return jnp.asarray(pe)


def init_decoder_params(key, num_layers, d_model, num_heads, dim_ff, vocab_size,
                        max_len=512):
    assert d_model % num_heads == 0, "d_model must be divisible by num_heads"
    # Note (v6e/v7x): head_dim = d_model/num_heads is the MXU contraction dim for
    # QK^T; prefer head_dim >= 128 when the model allows for full MXU utilization.

    def dense(k, din, dout):
        w = (0.02 * jax.random.normal(k, (din, dout), jnp.float32)).astype(jnp.bfloat16)
        return w, jnp.zeros((1, dout), jnp.float32)

    def attn_params(k):
        ks = jax.random.split(k, 3)
        wq, bq = dense(ks[0], d_model, d_model)
        wkv, bkv = dense(ks[1], d_model, 2 * d_model)   # packed [Wk | Wv]
        wo, bo = dense(ks[2], d_model, d_model)
        return dict(wq=wq, bq=bq, wkv=wkv, bkv=bkv, wo=wo, bo=bo)

    def norm_params():
        return dict(gamma=jnp.ones((1, d_model), jnp.float32),
                    beta=jnp.zeros((1, d_model), jnp.float32))

    keys = jax.random.split(key, num_layers + 2)
    layers = []
    for l in range(num_layers):
        lk = jax.random.split(keys[l], 4)
        w1, b1 = dense(lk[2], d_model, dim_ff)
        w2, b2 = dense(lk[3], dim_ff, d_model)
        layers.append(dict(
            self_attn=attn_params(lk[0]),
            cross_attn=attn_params(lk[1]),
            ff=dict(w1=w1, b1=b1, w2=w2, b2=b2),
            norm1=norm_params(), norm2=norm_params(), norm3=norm_params(),
        ))
    embed = 0.02 * jax.random.normal(keys[-2], (vocab_size, d_model), jnp.float32)
    out_w, out_b = dense(keys[-1], d_model, vocab_size)
    return dict(embed=embed, pos_enc=_sinusoidal_pe(max_len, d_model),
                layers=layers, out_w=out_w, out_b=out_b,
                num_heads=num_heads, d_model=d_model)


def decoder_forward(params, tokens, enc_out=None, src_mask=None, tgt_mask=None):
    num_heads = params["num_heads"]
    d_model = params["d_model"]
    B, S = tokens.shape

    # TokenEmbedding: gather * sqrt(d_model)  (glue: embedding lookup in JAX)
    x = jnp.take(params["embed"], tokens, axis=0) * math.sqrt(d_model)
    # PositionalEncoding: add sinusoidal table (dropout == identity at inference)
    x = x + params["pos_enc"][:S][None, :, :]
    # bf16 activations between kernels halve layer-boundary HBM traffic;
    # residual / LayerNorm math stays f32 inside the kernels.
    x = x.astype(jnp.bfloat16)
    enc_bf = enc_out.astype(jnp.bfloat16) if enc_out is not None else None

    # Precompute additive masks once (0 = keep, -1e9 = masked), stored bf16 to
    # halve the per-grid-step mask DMA. Fully-masked rows give uniform weights
    # (not NaN like PyTorch) — acceptable for inference.
    # TODO(synk): per-example (batched) padding masks need a batch dim on the
    #             mask BlockSpec; current masks are 2-D and shared across the batch.
    def additive(mask, rows, cols):
        if mask is None:
            return jnp.zeros((rows, cols), jnp.bfloat16)
        return jnp.where(mask > 0, 0.0, -1e9).astype(jnp.bfloat16)

    tgt_add = additive(tgt_mask, S, S)
    src_add = (additive(src_mask, S, enc_out.shape[1])
               if enc_out is not None else None)

    for layer in params["layers"]:
        # self-attention + residual + norm1
        x = mha_addnorm(x, x, tgt_add, layer["self_attn"], layer["norm1"], num_heads)
        if enc_out is not None:
            # cross-attention + residual + norm2
            x = mha_addnorm(x, enc_bf, src_add, layer["cross_attn"],
                            layer["norm2"], num_heads)
            x = ffn_addnorm(x, layer["ff"], layer["norm3"])
        else:
            # norm2 fused into the FFN kernel -> no extra HBM round trip
            x = ffn_addnorm(x, layer["ff"], layer["norm3"], pre_norm=layer["norm2"])

    return linear(x, params["out_w"], params["out_b"])


# ----------------------------------------------------------------------------
if __name__ == "__main__":
    B, S, S_ENC = 2, 8, 8
    NUM_LAYERS, D_MODEL, NUM_HEADS, DIM_FF, VOCAB = 2, 32, 4, 64, 50

    key = jax.random.PRNGKey(0)
    kp, kt, ke = jax.random.split(key, 3)

    params = init_decoder_params(kp, NUM_LAYERS, D_MODEL, NUM_HEADS, DIM_FF, VOCAB)
    tokens = jax.random.randint(kt, (B, S), 0, VOCAB, dtype=jnp.int32)
    enc_out = 0.1 * jax.random.normal(ke, (B, S_ENC, D_MODEL), jnp.float32)

    # causal target mask (1 = keep, 0 = masked), full source mask
    tgt_mask = jnp.tril(jnp.ones((S, S), jnp.float32))
    src_mask = jnp.ones((S, S_ENC), jnp.float32)

    # Path 1: with encoder output (self-attn + cross-attn + FFN per layer)
    logits = decoder_forward(params, tokens, enc_out=enc_out,
                             src_mask=src_mask, tgt_mask=tgt_mask)
    logits = jax.block_until_ready(logits)
    assert logits.shape == (B, S, VOCAB)
    assert bool(jnp.all(jnp.isfinite(logits)))

    # Path 2: no encoder output (exercises the fused pre-norm FFN kernel)
    logits2 = decoder_forward(params, tokens, tgt_mask=tgt_mask)
    logits2 = jax.block_until_ready(logits2)
    assert logits2.shape == (B, S, VOCAB)
    assert bool(jnp.all(jnp.isfinite(logits2)))

    print("KERNEL_OK")
</pallas_src>

<mosaic_0001>
module attributes {stable_mosaic.version = 11 : i64} {
  func.func @_mha_addnorm_kernel(%arg0: i32, %arg1: i32, %arg2: memref<1x8x32xbf16, #tpu.memory_space<vmem>>, %arg3: memref<1x8x32xbf16, #tpu.memory_space<vmem>>, %arg4: memref<8x8xbf16, #tpu.memory_space<vmem>>, %arg5: memref<32x32xbf16, #tpu.memory_space<vmem>>, %arg6: memref<1x32xf32, #tpu.memory_space<vmem>>, %arg7: memref<32x64xbf16, #tpu.memory_space<vmem>>, %arg8: memref<1x64xf32, #tpu.memory_space<vmem>>, %arg9: memref<32x32xbf16, #tpu.memory_space<vmem>>, %arg10: memref<1x32xf32, #tpu.memory_space<vmem>>, %arg11: memref<1x32xf32, #tpu.memory_space<vmem>>, %arg12: memref<1x32xf32, #tpu.memory_space<vmem>>, %arg13: memref<1x8x32xbf16, #tpu.memory_space<vmem>>, %arg14: memref<4x8x8xbf16, #tpu.memory_space<vmem>>, %arg15: memref<4x8x8xbf16, #tpu.memory_space<vmem>>) attributes {dimension_semantics = [#tpu.dimension_semantics<parallel>, #tpu.dimension_semantics<arbitrary>], iteration_bounds = array<i64: 2, 1>, scalar_prefetch = 0 : i64, scratch_operands = 2 : i64, tpu.core_type = #tpu.core_type<tc>, window_params = [{transform_indices = @transform_0, window_bounds = array<i64: 1, 8, 32>}, {transform_indices = @transform_1, window_bounds = array<i64: 1, 8, 32>}, {transform_indices = @transform_2, window_bounds = array<i64: 8, 8>}, {pipeline_mode = #tpu.pipeline_mode<synchronous>, transform_indices = @transform_3, window_bounds = array<i64: 32, 32>}, {pipeline_mode = #tpu.pipeline_mode<synchronous>, transform_indices = @transform_4, window_bounds = array<i64: 1, 32>}, {pipeline_mode = #tpu.pipeline_mode<synchronous>, transform_indices = @transform_5, window_bounds = array<i64: 32, 64>}, {pipeline_mode = #tpu.pipeline_mode<synchronous>, transform_indices = @transform_6, window_bounds = array<i64: 1, 64>}, {pipeline_mode = #tpu.pipeline_mode<synchronous>, transform_indices = @transform_7, window_bounds = array<i64: 32, 32>}, {pipeline_mode = #tpu.pipeline_mode<synchronous>, transform_indices = @transform_8, window_bounds = array<i64: 1, 32>}, {pipeline_mode = #tpu.pipeline_mode<synchronous>, transform_indices = @transform_9, window_bounds = array<i64: 1, 32>}, {pipeline_mode = #tpu.pipeline_mode<synchronous>, transform_indices = @transform_10, window_bounds = array<i64: 1, 32>}, {transform_indices = @transform_11, window_bounds = array<i64: 1, 8, 32>}]} {
    %c0_i32 = arith.constant 0 : i32
    %0 = arith.cmpi eq, %arg1, %c0_i32 : i32
    %1 = arith.extui %0 : i1 to i32
    %c0_i32_0 = arith.constant 0 : i32
    %2 = arith.cmpi ne, %1, %c0_i32_0 : i32
    scf.if %2 {
      %c0_37 = arith.constant 0 : index
      %c0_38 = arith.constant 0 : index
      %c0_39 = arith.constant 0 : index
      %73 = vector.load %arg3[%c0_37, %c0_38, %c0_39] : memref<1x8x32xbf16, #tpu.memory_space<vmem>>, vector<1x8x32xbf16>
      %74 = vector.shape_cast %73 : vector<1x8x32xbf16> to vector<8x32xbf16>
      %c0_40 = arith.constant 0 : index
      %c0_41 = arith.constant 0 : index
      %75 = vector.load %arg7[%c0_40, %c0_41] : memref<32x64xbf16, #tpu.memory_space<vmem>>, vector<32x64xbf16>
      %cst_42 = arith.constant dense<0.000000e+00> : vector<8x64xf32>
      %76 = tpu.matmul %74, %75, %cst_42 {dimension_numbers = #tpu.dot_dimension_numbers<[1], [0], [0], [1], [0, 0, 1, 1], [], []>} : vector<8x32xbf16>, vector<32x64xbf16>, vector<8x64xf32> -> vector<8x64xf32>
      %c0_43 = arith.constant 0 : index
      %c0_44 = arith.constant 0 : index
      %77 = vector.load %arg8[%c0_43, %c0_44] : memref<1x64xf32, #tpu.memory_space<vmem>>, vector<1x64xf32>
      %78 = vector.broadcast %77 : vector<1x64xf32> to vector<8x64xf32>
      %79 = arith.addf %76, %78 : vector<8x64xf32>
      %80 = vector.extract_strided_slice %79 {offsets = [0, 0], sizes = [8, 32], strides = [1, 1]} : vector<8x64xf32> to vector<8x32xf32>
      %81 = vector.extract_strided_slice %79 {offsets = [0, 32], sizes = [8, 32], strides = [1, 1]} : vector<8x64xf32> to vector<8x32xf32>
      %82 = vector.shape_cast %80 : vector<8x32xf32> to vector<8x4x8xf32>
      %83 = tpu.transpose %82, [1, 0, 2] : vector<8x4x8xf32> -> vector<4x8x8xf32>
      %84 = arith.truncf %83 : vector<4x8x8xf32> to vector<4x8x8xbf16>
      %c0_45 = arith.constant 0 : index
      %c0_46 = arith.constant 0 : index
      %c0_47 = arith.constant 0 : index
      %85 = vector.load %arg14[%c0_45, %c0_46, %c0_47] : memref<4x8x8xbf16, #tpu.memory_space<vmem>>, vector<4x8x8xbf16>
      tpu.vector_store %arg14[%c0_45, %c0_46, %c0_47], %84 {strides = array<i32>} : memref<4x8x8xbf16, #tpu.memory_space<vmem>>, vector<4x8x8xbf16>,
      %86 = vector.shape_cast %81 : vector<8x32xf32> to vector<8x4x8xf32>
      %87 = tpu.transpose %86, [1, 0, 2] : vector<8x4x8xf32> -> vector<4x8x8xf32>
      %88 = arith.truncf %87 : vector<4x8x8xf32> to vector<4x8x8xbf16>
      %c0_48 = arith.constant 0 : index
      %c0_49 = arith.constant 0 : index
      %c0_50 = arith.constant 0 : index
      %89 = vector.load %arg15[%c0_48, %c0_49, %c0_50] : memref<4x8x8xbf16, #tpu.memory_space<vmem>>, vector<4x8x8xbf16>
      tpu.vector_store %arg15[%c0_48, %c0_49, %c0_50], %88 {strides = array<i32>} : memref<4x8x8xbf16, #tpu.memory_space<vmem>>, vector<4x8x8xbf16>,
    } else {
    }
    %c0 = arith.constant 0 : index
    %c0_1 = arith.constant 0 : index
    %c0_2 = arith.constant 0 : index
    %3 = vector.load %arg2[%c0, %c0_1, %c0_2] : memref<1x8x32xbf16, #tpu.memory_space<vmem>>, vector<1x8x32xbf16>
    %4 = vector.shape_cast %3 : vector<1x8x32xbf16> to vector<8x32xbf16>
    %c0_3 = arith.constant 0 : index
    %c0_4 = arith.constant 0 : index
    %5 = vector.load %arg5[%c0_3, %c0_4] : memref<32x32xbf16, #tpu.memory_space<vmem>>, vector<32x32xbf16>
    %cst = arith.constant dense<0.000000e+00> : vector<8x32xf32>
    %6 = tpu.matmul %4, %5, %cst {dimension_numbers = #tpu.dot_dimension_numbers<[1], [0], [0], [1], [0, 0, 1, 1], [], []>} : vector<8x32xbf16>, vector<32x32xbf16>, vector<8x32xf32> -> vector<8x32xf32>
    %c0_5 = arith.constant 0 : index
    %c0_6 = arith.constant 0 : index
    %7 = vector.load %arg6[%c0_5, %c0_6] : memref<1x32xf32, #tpu.memory_space<vmem>>, vector<1x32xf32>
    %8 = vector.broadcast %7 : vector<1x32xf32> to vector<8x32xf32>
    %9 = arith.addf %6, %8 : vector<8x32xf32>
    %cst_7 = arith.constant 0.353553385 : f32
    %10 = vector.broadcast %cst_7 : f32 to vector<8x32xf32>
    %11 = arith.mulf %9, %10 : vector<8x32xf32>
    %12 = vector.shape_cast %11 : vector<8x32xf32> to vector<8x4x8xf32>
    %13 = tpu.transpose %12, [1, 0, 2] : vector<8x4x8xf32> -> vector<4x8x8xf32>
    %14 = arith.truncf %13 : vector<4x8x8xf32> to vector<4x8x8xbf16>
    %c0_8 = arith.constant 0 : index
    %c0_9 = arith.constant 0 : index
    %c0_10 = arith.constant 0 : index
    %15 = vector.load %arg14[%c0_8, %c0_9, %c0_10] : memref<4x8x8xbf16, #tpu.memory_space<vmem>>, vector<4x8x8xbf16>
    "tpu.trace_start"() <{level = 10 : i32, message = "hqd,hkd->hqk"}> : () -> ()
    %cst_11 = arith.constant dense<0.000000e+00> : vector<4x8x8xf32>
    %16 = tpu.matmul %14, %15, %cst_11 {dimension_numbers = #tpu.dot_dimension_numbers<[2], [2], [1], [1], [0, 0, 0, 1, 1, 1], [0], [0]>} : vector<4x8x8xbf16>, vector<4x8x8xbf16>, vector<4x8x8xf32> -> vector<4x8x8xf32>
    "tpu.trace_stop"() : () -> ()
    %c0_12 = arith.constant 0 : index
    %c0_13 = arith.constant 0 : index
    %17 = vector.load %arg4[%c0_12, %c0_13] : memref<8x8xbf16, #tpu.memory_space<vmem>>, vector<8x8xbf16>
    %18 = arith.extf %17 : vector<8x8xbf16> to vector<8x8xf32>
    %19 = vector.shape_cast %18 : vector<8x8xf32> to vector<1x8x8xf32>
    %20 = vector.broadcast %19 : vector<1x8x8xf32> to vector<4x8x8xf32>
    %21 = arith.addf %16, %20 : vector<4x8x8xf32>
    %cst_14 = arith.constant dense<0xFF800000> : vector<4x8xf32>
    %22 = vector.multi_reduction <maximumf>, %21, %cst_14 [2] : vector<4x8x8xf32> to vector<4x8xf32>
    %23 = vector.shape_cast %22 : vector<4x8xf32> to vector<4x8x1xf32>
    %24 = vector.broadcast %23 : vector<4x8x1xf32> to vector<4x8x8xf32>
    %25 = arith.subf %21, %24 : vector<4x8x8xf32>
    %26 = math.exp %25 : vector<4x8x8xf32>
    %cst_15 = arith.constant dense<0.000000e+00> : vector<4x8xf32>
    %27 = vector.multi_reduction <add>, %26, %cst_15 [2] : vector<4x8x8xf32> to vector<4x8xf32>
    %28 = vector.shape_cast %27 : vector<4x8xf32> to vector<4x8x1xf32>
    %29 = tpu.reciprocal %28 {approx = true} : vector<4x8x1xf32> -> vector<4x8x1xf32>
    %30 = vector.broadcast %29 : vector<4x8x1xf32> to vector<4x8x8xf32>
    %31 = arith.mulf %26, %30 : vector<4x8x8xf32>
    %32 = arith.truncf %31 : vector<4x8x8xf32> to vector<4x8x8xbf16>
    %c0_16 = arith.constant 0 : index
    %c0_17 = arith.constant 0 : index
    %c0_18 = arith.constant 0 : index
    %33 = vector.load %arg15[%c0_16, %c0_17, %c0_18] : memref<4x8x8xbf16, #tpu.memory_space<vmem>>, vector<4x8x8xbf16>
    "tpu.trace_start"() <{level = 10 : i32, message = "hqk,hkd->hqd"}> : () -> ()
    %cst_19 = arith.constant dense<0.000000e+00> : vector<4x8x8xf32>
    %34 = tpu.matmul %32, %33, %cst_19 {dimension_numbers = #tpu.dot_dimension_numbers<[2], [1], [1], [2], [0, 0, 0, 1, 1, 2], [0], [0]>} : vector<4x8x8xbf16>, vector<4x8x8xbf16>, vector<4x8x8xf32> -> vector<4x8x8xf32>
    "tpu.trace_stop"() : () -> ()
    %35 = tpu.transpose %34, [1, 0, 2] : vector<4x8x8xf32> -> vector<8x4x8xf32>
    %36 = vector.shape_cast %35 : vector<8x4x8xf32> to vector<8x32xf32>
    %37 = arith.truncf %36 : vector<8x32xf32> to vector<8x32xbf16>
    %c0_20 = arith.constant 0 : index
    %c0_21 = arith.constant 0 : index
    %38 = vector.load %arg9[%c0_20, %c0_21] : memref<32x32xbf16, #tpu.memory_space<vmem>>, vector<32x32xbf16>
    %cst_22 = arith.constant dense<0.000000e+00> : vector<8x32xf32>
    %39 = tpu.matmul %37, %38, %cst_22 {dimension_numbers = #tpu.dot_dimension_numbers<[1], [0], [0], [1], [0, 0, 1, 1], [], []>} : vector<8x32xbf16>, vector<32x32xbf16>, vector<8x32xf32> -> vector<8x32xf32>
    %c0_23 = arith.constant 0 : index
    %c0_24 = arith.constant 0 : index
    %40 = vector.load %arg10[%c0_23, %c0_24] : memref<1x32xf32, #tpu.memory_space<vmem>>, vector<1x32xf32>
    %41 = vector.broadcast %40 : vector<1x32xf32> to vector<8x32xf32>
    %42 = arith.addf %39, %41 : vector<8x32xf32>
    %43 = arith.extf %4 : vector<8x32xbf16> to vector<8x32xf32>
    %44 = arith.addf %43, %42 : vector<8x32xf32>
    %c0_25 = arith.constant 0 : index
    %c0_26 = arith.constant 0 : index
    %45 = vector.load %arg11[%c0_25, %c0_26] : memref<1x32xf32, #tpu.memory_space<vmem>>, vector<1x32xf32>
    %c0_27 = arith.constant 0 : index
    %c0_28 = arith.constant 0 : index
    %46 = vector.load %arg12[%c0_27, %c0_28] : memref<1x32xf32, #tpu.memory_space<vmem>>, vector<1x32xf32>
    %cst_29 = arith.constant dense<0.000000e+00> : vector<8xf32>
    %47 = vector.multi_reduction <add>, %44, %cst_29 [1] : vector<8x32xf32> to vector<8xf32>
    %48 = vector.shape_cast %47 : vector<8xf32> to vector<8x1xf32>
    %cst_30 = arith.constant 3.200000e+01 : f32
    %49 = vector.broadcast %cst_30 : f32 to vector<8x1xf32>
    %50 = arith.divf %48, %49 : vector<8x1xf32>
    %51 = vector.broadcast %50 : vector<8x1xf32> to vector<8x32xf32>
    %52 = arith.subf %44, %51 : vector<8x32xf32>
    %53 = arith.mulf %52, %52 : vector<8x32xf32>
    %cst_31 = arith.constant dense<0.000000e+00> : vector<8xf32>
    %54 = vector.multi_reduction <add>, %53, %cst_31 [1] : vector<8x32xf32> to vector<8xf32>
    %55 = vector.shape_cast %54 : vector<8xf32> to vector<8x1xf32>
    %cst_32 = arith.constant 3.200000e+01 : f32
    %56 = vector.broadcast %cst_32 : f32 to vector<8x1xf32>
    %57 = arith.divf %55, %56 : vector<8x1xf32>
    %58 = vector.broadcast %50 : vector<8x1xf32> to vector<8x32xf32>
    %59 = arith.subf %44, %58 : vector<8x32xf32>
    %cst_33 = arith.constant 9.99999974E-6 : f32
    %60 = vector.broadcast %cst_33 : f32 to vector<8x1xf32>
    %61 = arith.addf %57, %60 : vector<8x1xf32>
    %62 = math.rsqrt %61 : vector<8x1xf32>
    %63 = vector.broadcast %62 : vector<8x1xf32> to vector<8x32xf32>
    %64 = arith.mulf %59, %63 : vector<8x32xf32>
    %65 = vector.broadcast %45 : vector<1x32xf32> to vector<8x32xf32>
    %66 = arith.mulf %64, %65 : vector<8x32xf32>
    %67 = vector.broadcast %46 : vector<1x32xf32> to vector<8x32xf32>
    %68 = arith.addf %66, %67 : vector<8x32xf32>
    %69 = arith.truncf %68 : vector<8x32xf32> to vector<8x32xbf16>
    %c0_34 = arith.constant 0 : index
    %c0_35 = arith.constant 0 : index
    %c0_36 = arith.constant 0 : index
    %70 = vector.load %arg13[%c0_34, %c0_35, %c0_36] : memref<1x8x32xbf16, #tpu.memory_space<vmem>>, vector<1x8x32xbf16>
    %71 = vector.shape_cast %70 : vector<1x8x32xbf16> to vector<8x32xbf16>
    %72 = vector.shape_cast %69 : vector<8x32xbf16> to vector<1x8x32xbf16>
    tpu.vector_store %arg13[%c0_34, %c0_35, %c0_36], %72 {strides = array<i32>} : memref<1x8x32xbf16, #tpu.memory_space<vmem>>, vector<1x8x32xbf16>,
    return
  }
  func.func @transform_0(%arg0: i32, %arg1: i32) -> (i32, i32, i32) {
    %c0_i32 = arith.constant 0 : i32
    %c0_i32_0 = arith.constant 0 : i32
    return %arg0, %arg1, %c0_i32 : i32, i32, i32
  }
  func.func @transform_1(%arg0: i32, %arg1: i32) -> (i32, i32, i32) {
    %c0_i32 = arith.constant 0 : i32
    %c0_i32_0 = arith.constant 0 : i32
    %c0_i32_1 = arith.constant 0 : i32
    return %arg0, %c0_i32, %c0_i32_0 : i32, i32, i32
  }
  func.func @transform_2(%arg0: i32, %arg1: i32) -> (i32, i32) {
    %c0_i32 = arith.constant 0 : i32
    %c0_i32_0 = arith.constant 0 : i32
    return %arg1, %c0_i32 : i32, i32
  }
  func.func @transform_3(%arg0: i32, %arg1: i32) -> (i32, i32) {
    %c0_i32 = arith.constant 0 : i32
    %c0_i32_0 = arith.constant 0 : i32
    %c0_i32_1 = arith.constant 0 : i32
    return %c0_i32, %c0_i32_0 : i32, i32
  }
  func.func @transform_4(%arg0: i32, %arg1: i32) -> (i32, i32) {
    %c0_i32 = arith.constant 0 : i32
    %c0_i32_0 = arith.constant 0 : i32
    %c0_i32_1 = arith.constant 0 : i32
    return %c0_i32, %c0_i32_0 : i32, i32
  }
  func.func @transform_5(%arg0: i32, %arg1: i32) -> (i32, i32) {
    %c0_i32 = arith.constant 0 : i32
    %c0_i32_0 = arith.constant 0 : i32
    %c0_i32_1 = arith.constant 0 : i32
    return %c0_i32, %c0_i32_0 : i32, i32
  }
  func.func @transform_6(%arg0: i32, %arg1: i32) -> (i32, i32) {
    %c0_i32 = arith.constant 0 : i32
    %c0_i32_0 = arith.constant 0 : i32
    %c0_i32_1 = arith.constant 0 : i32
    return %c0_i32, %c0_i32_0 : i32, i32
  }
  func.func @transform_7(%arg0: i32, %arg1: i32) -> (i32, i32) {
    %c0_i32 = arith.constant 0 : i32
    %c0_i32_0 = arith.constant 0 : i32
    %c0_i32_1 = arith.constant 0 : i32
    return %c0_i32, %c0_i32_0 : i32, i32
  }
  func.func @transform_8(%arg0: i32, %arg1: i32) -> (i32, i32) {
    %c0_i32 = arith.constant 0 : i32
    %c0_i32_0 = arith.constant 0 : i32
    %c0_i32_1 = arith.constant 0 : i32
    return %c0_i32, %c0_i32_0 : i32, i32
  }
  func.func @transform_9(%arg0: i32, %arg1: i32) -> (i32, i32) {
    %c0_i32 = arith.constant 0 : i32
    %c0_i32_0 = arith.constant 0 : i32
    %c0_i32_1 = arith.constant 0 : i32
    return %c0_i32, %c0_i32_0 : i32, i32
  }
  func.func @transform_10(%arg0: i32, %arg1: i32) -> (i32, i32) {
    %c0_i32 = arith.constant 0 : i32
    %c0_i32_0 = arith.constant 0 : i32
    %c0_i32_1 = arith.constant 0 : i32
    return %c0_i32, %c0_i32_0 : i32, i32
  }
  func.func @transform_11(%arg0: i32, %arg1: i32) -> (i32, i32, i32) {
    %c0_i32 = arith.constant 0 : i32
    %c0_i32_0 = arith.constant 0 : i32
    return %arg0, %arg1, %c0_i32 : i32, i32, i32
  }
}

</mosaic_0001>

<bundles_post_ra>
// kernel: tpu_custom_call.1
= control target key start
LH: loop header
LB: loop body
LE: loop exit
PB: predicated region body
PF: predicated region fallthrough
CT: control target
= control target key end

     0   :  { %s2596_s0 = inlined_call_operand.hbm [shape: bf16[2,8,32], index: 0, kind: input, shape index: {}]   ;;  %s2597_s1 = inlined_call_operand.hbm [shape: bf16[2,8,32], index: 1, kind: input, shape index: {}]   ;;  %s2598_s2 = inlined_call_operand.hbm [shape: bf16[8,8], index: 2, kind: input, shape index: {}]   ;;  %s2599_s3 = inlined_call_operand.hbm [shape: bf16[32,32], index: 3, kind: input, shape index: {}]   ;;  %s2600_s4 = inlined_call_operand.vmem [shape: f32[1,32], index: 4, kind: input, shape index: {}]   ;;  %s2601_s5 = inlined_call_operand.hbm [shape: bf16[32,64], index: 5, kind: input, shape index: {}]   ;;  %s2602_s6 = inlined_call_operand.vmem [shape: f32[1,64], index: 6, kind: input, shape index: {}]   ;;  %s2603_s7 = inlined_call_operand.hbm [shape: bf16[32,32], index: 7, kind: input, shape index: {}]   ;;  %s2604_s8 = inlined_call_operand.vmem [shape: f32[1,32], index: 8, kind: input, shape index: {}]   ;;  %s2605_s9 = inlined_call_operand.vmem [shape: f32[1,32], index: 9, kind: input, shape index: {}]   ;;  %s2606_s10 = inlined_call_operand.vmem [shape: f32[1,32], index: 10, kind: input, shape index: {}]   ;;  %s2607_s11 = inlined_call_operand.hbm [shape: bf16[2,8,32], index: 11, kind: output, shape index: {}]  }
   0x1   :  { %2616 = sst [smem:[#allocation29_spill]] %s2598_s2 }
   0x2   :  { %2617 = sst [smem:[#allocation30_spill]] %s2599_s3 }
   0x3   :  { %2618 = sst [smem:[#allocation31_spill]] %s2601_s5 }
   0x4   :  { %2619 = sst [smem:[#allocation32_spill]] %s2603_s7 }
   0x5   :  { %2620 = sst [smem:[#allocation33_spill]] %s2607_s11 }
   0x6   :  { %16 = vsyncpa [#allocation5], 0 }
   0x7   :  { %18 = vsyncpa [#allocation5 + $0x1], 0 }
   0x8   :  { %19 = vsyncpa [#allocation8], 0 }
   0x9   :  { %21 = vsyncpa [#allocation8 + $0x1], 0 }
   0xa   :  { %22 = vsyncpa [#allocation11], 0 }
   0xb   :  { %23 = vsyncpa [#allocation14], 0 }
   0xc   :  { %24 = vsyncpa [#allocation6], 0 }
   0xd   :  { %26 = vsyncpa [#allocation6 + $0x1], 0  ;;  %s2154_s17 = smov 0   ;;  %s2156_s18 = smov 0  }
   0xe   :  { %s2158_s19 = smov 0   ;;  %s2160_s20 = smov 0  }
   0xf   :  { %s2162_s21 = smov 0   ;;  %s2164_s22 = smov 0  }
  0x10 LB: > { %2621 = sst [smem:[#allocation22_spill]] %s2056_s17  ;;  %s2185_s23 = sadd.s32 4294967295, %s2076_s22   ;;  %s2076_s22 = sphi %s2164_s22, %s32_s22   ;;  %s2072_s21 = sphi %s2162_s21, %s2645_s21   ;;  %s2068_s20 = sphi %s2160_s20, %s2644_s20   ;;  %s2064_s19 = sphi %s2158_s19, %s2643_s19   ;;  %s2060_s18 = sphi %s2156_s18, %s2647_s18   ;;  %s2056_s17 = sphi %s2154_s17, %s2646_s17  }
  0x11   : > { %2622 = sst [smem:[#allocation23_spill]] %s2064_s19  ;;  %p1580_p0 = scmp.ge.s32.totalorder %s2076_s22, 1 }
  0x12   : > { %2623 = sst [smem:[#allocation24_spill]] %s2072_s21  ;;  %p67_p1 = scmp.eq.s32.totalorder %s2185_s23, 0 }
  0x13   : > { %p325_p2 = scmp.lt.s32.totalorder %s2076_s22, 3  ;;  %s2624_s2 = sld [smem:[#allocation29_spill]] }
  0x14   : > { %p1585_p4 = scmp.ge.s32.totalorder %s2076_s22, 2  ;;  %s2078_s28 = smov [#allocation9]  }
  0x15   : > { %p2193_p3 = pnand %p1580_p0, %p325_p2  ;;  %s341_s29 = sshll.u32 %s2078_s28, 4  ;;  %s342_s29 = int_to_ptr.vmem [resolvable:$true] %s341_s29 }
  0x16   : > { %s2626_s3 = sld [smem:[#allocation30_spill]]  ;;  %s2079_s15 = smov [#allocation10]  }
  0x17   : > { %p1665_p5 = pneg %p2193_p3  ;;  %s352_s16 = sshll.u32 %s2079_s15, 4  ;;  %s353_s16 = int_to_ptr.vmem [resolvable:$true] %s352_s16 }
  0x18   : > { %s2080_s24 = smov 64   ;;  %s2081_s25 = smov 4  }
  0x19   : > { %s339_s26 = sshll.u32 %s2624_s2, 4  ;;  %p2205_p6 = pnand %p1665_p5, %p67_p1  ;;  %s340_s26 = int_to_ptr.hbm [resolvable:$true] %s339_s26 }
  0x1a   : > { %s2628_s5 = sld [smem:[#allocation31_spill]]  ;;  %s2082_s15 = smov [#allocation12]  }
  0x1b   : > { %1668 = dma.hbm_to_vmem [thread:$0]  (!%p2205_p6), %s340_s26, 64, %s342_s29, [#allocation8]  }
  0x1c   : > { %s350_s13 = sshll.u32 %s2626_s3, 4  ;;  %s369_s2 = sshll.u32 %s2082_s15, 4  ;;  %s351_s13 = int_to_ptr.hbm [resolvable:$true] %s350_s13  ;;  %s370_s2 = int_to_ptr.vmem [resolvable:$true] %s369_s2 }
  0x1d   : > { %1671 = dma.hbm_to_vmem [thread:$0]  (!%p2205_p6), %s351_s13, 256, %s353_s16, [#allocation11], %s2080_s24, %s2080_s24, %s2081_s25  }
  0x1e   : > { %s2629_s7 = sld [smem:[#allocation32_spill]]  ;;  %s2083_s13 = smov [#allocation13]  }
  0x1f   : > { %s386_s16 = sshll.u32 %s2083_s13, 4  ;;  %s1579_s28 = sadd.s32 4294967294, %s2076_s22   ;;  %s387_s16 = int_to_ptr.vmem [resolvable:$true] %s386_s16 }
  0x20   : > { %s367_s12 = sshll.u32 %s2628_s5, 4  ;;  %s44_s30 = sadd.s32 1, %s2072_s21  ;;  %s368_s12 = int_to_ptr.hbm [resolvable:$true] %s367_s12 }
  0x21   : > { %1674 = dma.hbm_to_vmem [thread:$0]  (!%p2205_p6), %s368_s12, 256, %s370_s2, [#allocation11], %s2080_s24, %s2080_s24, %s2081_s25  }
  0x22   : > { %p46_p7 = scmp.ge.s32.totalorder %s44_s30, 2  ;;  %s53_s15 = sadd.s32 1, %s2064_s19 }
  0x23   : > { %p60_p8 = scmp.ne.s32.totalorder %s2064_s19, %s2060_s18  ;;  %p61_p9 = scmp.eq.s32.totalorder %s2076_s22, 0 }
  0x24   : > { %s384_s3 = sshll.u32 %s2629_s7, 4  ;;  %s2649_s30 = smov (%p46_p7, %s44_s30), 0  ;;  %s385_s3 = int_to_ptr.hbm [resolvable:$true] %s384_s3 }
  0x25   : > { %1677 = dma.hbm_to_vmem [thread:$0]  (!%p2205_p6), %s385_s3, 256, %s387_s16, [#allocation14], %s2080_s24, %s2080_s24, %s2081_s25  }
  0x26   : > { %2630 = sst [smem:[#allocation25_spill]] %s2649_s30  ;;  %p2231_p10 = por %p61_p9, %p60_p8 }
  0x27   : > { %p66_p11 = scmp.ne.s32.totalorder %s2060_s18, %s2056_s17  ;;  %s48_s14 = ssub.s32 %s2072_s21, %s2649_s30 }
  0x28   : > { %p312_p12 = scmp.eq.s32.totalorder %s2185_s23, 1  ;;  %p51_p13 = scmp.eq.s32.totalorder %s48_s14, 0 }
  0x29   : > { %p2242_p0 = por %p67_p1, %p66_p11  ;;  %p318_p5 = scmp.eq.s32.totalorder %s1579_s28, 1 }
  0x2a   : > { %p2246_p2 = por %p312_p12, %p60_p8  ;;  %p1693_p7 = scmp.lt.s32.totalorder %s2076_s22, 2 }
  0x2b   : > { %s2251_s25 = scalar_select %p51_p13, %s2064_s19, %s53_s15  }
  0x2c   : > { %s2633_s24 = scalar_select %p2246_p2, 1, 0 }
  0x2d   : > { %2635 = sst [smem:[#allocation27_spill]] %s2251_s25  ;;  %p2253_p6 = por %p318_p5, %p66_p11 }
  0x2e   : > { %2634 = sst [smem:[#allocation26_spill]] %s2633_s24  ;;  %s409_s26 = sand.u32 1, %s2064_s19  }
  0x2f   : > { %s2636_s12 = scalar_select %p2253_p6, 1, 0 }
  0x30   : > { %s1587_s29 = sshll.u32 %s2072_s21, 2  ;;  %s1586_s13 = sshll.u32 %s409_s26, 2 }
  0x31   : > { %2637 = sst [smem:[#allocation28_spill]] %s2636_s12  ;;  %s418_s5 = scalar_lea.hbm %s2596_s0, %s1587_s29 }
  0x32   : > { %s420_s7 = sshll.u32 %s418_s5, 4  ;;  %s413_s30 = scalar_lea.vmem [#allocation4], %s1586_s13  ;;  %s421_s7 = int_to_ptr.hbm [resolvable:$true] %s420_s7 }
  0x33   : > { %s422_s17 = sshll.u32 %s413_s30, 4  ;;  %p1679_p8 = pnand %p1693_p7, %p2231_p10  ;;  %s423_s17 = int_to_ptr.vmem [resolvable:$true] %s422_s17 }
  0x34   : > { %s437_s25 = scalar_lea.hbm %s2597_s1, %s1587_s29  ;;  %s429_s12 = sand.u32 1, %s2076_s22  }
  0x35   : > { %s410_s24 = scalar_lea.sflag [#allocation5], %s409_s26  ;;  %s439_s21 = sshll.u32 %s437_s25, 4  ;;  %s440_s21 = int_to_ptr.hbm [resolvable:$true] %s439_s21 }
  0x36   : > { %1681 = dma.hbm_to_vmem [thread:$0]  (!%p1679_p8), %s421_s7, 64, %s423_s17, %s410_s24  }
  0x37   : > { %s433_s19 = scalar_lea.vmem [#allocation7], %s1586_s13  ;;  %s430_s16 = scalar_lea.sflag [#allocation8], %s429_s12 }
  0x38   : > { %s441_s11 = sshll.u32 %s433_s19, 4  ;;  %450 = sbr.rel (%p2193_p3) target bundleno = 1467 (0x5bb), region = 64  ;;  %s442_s11 = int_to_ptr.vmem [resolvable:$true] %s441_s11 }
  0x39   : > { %1684 = dma.hbm_to_vmem [thread:$0]  (!%p1679_p8), %s440_s21, 64, %s442_s11, %s430_s16  }
  0x3a   : > { %s2272_s5 = sand.u32 (!%p2193_p3), 1, %s2060_s18  }
  0x3b   : > { %s2275_s30 = sshll.u32 (!%p2193_p3), %s2272_s5, 2  ;;  %s453_s7 = scalar_lea.sflag (!%p2193_p3), [#allocation5], %s2272_s5 }
  0x3c   : > { %s456_s17 = scalar_lea.vmem (!%p2193_p3), [#allocation4], %s2275_s30 }
  0x3d   : > { %2031 = dma.done.wait (%p2242_p0), %s453_s7, 64  }
  0x3e   : > { %2033 = vsyncadd (%p2242_p0), %s453_s7, 4294967232  ;;  %s462_s11 = sand.u32 1, %s2185_s23   ;;  %s466_s21 = scalar_lea.vmem [#allocation7], %s2275_s30 }
  0x3f   : > { %s463_s19 = scalar_lea.sflag [#allocation8], %s462_s11 }
  0x40   : > { %2035 = dma.done.wait (%p2242_p0), %s463_s19, 64  }
  0x41   : > { %2037 = vsyncadd (%p2242_p0), %s463_s19, 4294967232 }
  0x42   : > { %2039 = dma.done.wait (%p67_p1), [#allocation8], 64  }
  0x43   : > { %2041 = vsyncadd (%p67_p1), [#allocation8], 4294967232 }
  0x44   : > { %2043 = dma.done.wait (%p67_p1), [#allocation11], 512  }
  0x45   : > { %2045 = vsyncadd (%p67_p1), [#allocation11], 4294966784 }
  0x46   : > { %2047 = dma.done.wait (%p67_p1), [#allocation14], 256  }
  0x47   : > { %2049 = vsyncadd (%p67_p1), [#allocation14], 4294967040  ;;  %v1638_v0 = vld [vmem:[#allocation12 + $0x8] sm:$0xff]  ;;  %v1640_v1 = vld [vmem:[#allocation10 + $0x8] sm:$0xff]  ;;  %vm557_vm0 = vcmask 261120   ;;  %s2084_s24 = smov 104  }
  0x48   : > { %v1637_v2 = vld [vmem:[#allocation12] sm:$0xff]  ;;  %567 = vmatpush.bf16.msra.mxu0 %v1638_v0  ;;  %865 = vmatpush.bf16.msra.mxu1 %v1640_v1  ;;  %v1639_v3 = vld [vmem:[#allocation10] sm:$0xff]  ;;  %v1773_v6 = vld [vmem:[%s2602_s6] ss:$0 sm:$0xff]  ;;  %s2085_s25 = smov 120   ;;  %s2086_s12 = smov 112  }
  0x49   : > { %v536_v4 = vld [vmem:[%s466_s21] sm:$0xf]  ;;  %v2301_v5 = vld [vmem:[%s456_s17] sm:$0xf]  ;;  %v2087_v16 = vmov 1983009808  }
  0x4a   : > { %v1774_v7 = vld [vmem:[%s2600_s4] ss:$0 sm:$0xff]  ;;  %v590_v17 = vunpack.c.l.s4 %v2087_v16  ;;  %vm585_vm1 = vcmask 1047556   ;;  %v2088_v31 = vmov 1934713408   ;;  %vm699_vm2 = vcmask 60416  }
  0x4b   : > { %v614_v32 = vunpack.c.l.s4 %v2088_v31  ;;  %vm1004_vm3 = vcmask 64512   ;;  %s2089_s26 = smov 96   ;;  %vm1136_vm4 = vcmask 1043456   ;;  %s2090_s29 = smov 16   ;;  %vm1333_vm5 = vcmask 130048  }
  0x4c   : > { %568 = vmatpush.bf16.msra.mxu0 %v1637_v2  ;;  %866 = vmatpush.bf16.msra.mxu1 %v1639_v3  ;;  %v2323_v24 = vunpack.c.0.s8 %v590_v17  ;;  %s2091_s13 = smov 8   ;;  %s2092_s14 = smov 24   ;;  %vm1335_vm6 = vcmask 195584   ;;  %vm1416_vm11 = vcmask 257024  }
  0x4d   : > { %v2340_v44 = vunpack.c.0.s8 %v614_v32  ;;  %s1634_s16 = sshll.u32 %s2068_s20, 2  ;;  %s2638_s23 = sld [smem:[#allocation33_spill]] }
  0x4f   : > { %1606 = vmatmul.msk.bf16.vlgmr.msra.gmra.mxu0 %vm557_vm0, %v536_v4  ;;  %1615 = vmatmul.msk.bf16.vlgmr.msra.gmra.mxu1 %vm557_vm0, %v2301_v5 }
  0x53   : > { %s1430_s2 = scalar_lea.hbm %s2638_s23, %s1634_s16 }
  0xcc   : > { %v570_v8 = vpop.f32.mrf.mxu0  ;;  %v868_v9 = vpop.f32.mrf.mxu1 }
  0xcd   : > { %v2312_v10 = vadd.f32 %v1773_v6, %v570_v8  ;;  %v869_v11 = vadd.f32 %v1774_v7, %v868_v9 }
  0xcf   : > { %v872_v12 = vmul.f32 0.35355338, %v869_v11  ;;  %581 = vrot.lane.b32.xlu1 %v2312_v10, %s2084_s24  ;;  %575 = vrot.lane.b32.xlu0 %v2312_v10, %s2085_s25  ;;  %v587_v38 = vrot.slane %v2312_v10, 4 }
  0xd1   : > { %877 = vrot.lane.b32.xlu2 %v872_v12, %s2086_s12  ;;  %v886_v22 = vrot.slane %v872_v12, 4 }
  0xd4   : > { %v572_v13 = vpop.f32.mrf.mxu0  ;;  %v870_v14 = vpop.f32.mrf.mxu1 }
  0xd7   : > { %874 = vrot.lane.b32.xlu1 %v872_v12, %s2085_s25  ;;  %578 = vrot.lane.b32.xlu0 %v2312_v10, %s2086_s12  ;;  %s1434_s25 = sshll.u32 %s1430_s2, 4  ;;  %s1419_s12 = scalar_lea.sflag [#allocation6], %s2272_s5  ;;  %s1435_s25 = int_to_ptr.hbm [resolvable:$true] %s1434_s25 }
  0xd9   : > { %880 = vrot.lane.b32.xlu2 %v872_v12, %s2084_s24  ;;  %s530_s24 = scalar_lea.vmem [#allocation15], %s2275_s30  ;;  %s1998_s30 = scalar_lea.hbm %s2638_s23, 8 }
  0xda   : > { %s1432_s20 = sshll.u32 %s530_s24, 4  ;;  %s1433_s20 = int_to_ptr.vmem [resolvable:$true] %s1432_s20 }
 0x12b   : > { %v878_v15 = vpop.permute.xlu2 %877 }
 0x12c   : > { %v883_v18 = vrot.slane %v878_v15, 4  ;;  %v887_v26 = vsel %vm585_vm1, %v878_v15, %v886_v22 }
 0x12d   : > { %v895_v33 = vperm.slane %v887_v26, %v2323_v24 }
 0x12e   : > { %v885_v25 = vsel %vm585_vm1, %v883_v18, %v872_v12 }
 0x12f   : > { %v891_v29 = vperm.slane %v885_v25, %v2323_v24  ;;  %v922_v47 = vrot.slane %v895_v33, 4 }
 0x131   : > { %v910_v43 = vrot.slane %v891_v29, 4 }
 0x133   : > { %v881_v27 = vpop.permute.xlu2 %880 }
 0x134   : > { %v896_v34 = vrot.slane %v881_v27, 4 }
 0x141   : > { %v2317_v19 = vpop.permute.xlu1 %581  ;;  %v2319_v20 = vpop.permute.xlu0 %575 }
 0x142   : > { %v597_v21 = vrot.slane %v2317_v19, 4  ;;  %v599_v23 = vrot.slane %v2319_v20, 4 }
 0x144   : > { %v598_v28 = vsel %vm585_vm1, %v597_v21, %v2319_v20  ;;  %v600_v30 = vsel %vm585_vm1, %v2317_v19, %v599_v23 }
 0x145   : > { %v604_v35 = vperm.slane %v598_v28, %v2323_v24  ;;  %v608_v39 = vperm.slane %v600_v30, %v2323_v24 }
 0x147   : > { %v609_v55 = vrot.slane %v604_v35, 4  ;;  %v621_v56 = vrot.slane %v608_v39, 4 }
 0x149   : > { %v875_v36 = vpop.permute.xlu1 %874  ;;  %v2334_v37 = vpop.permute.xlu0 %578 }
 0x14a   : > { %v897_v40 = vsel %vm585_vm1, %v896_v34, %v875_v36  ;;  %v898_v41 = vrot.slane %v875_v36, 4  ;;  %v584_v42 = vrot.slane %v2334_v37, 4  ;;  %v588_v46 = vsel %vm585_vm1, %v2334_v37, %v587_v38 }
 0x14b   : > { %v903_v45 = vperm.slane %v897_v40, %v2323_v24  ;;  %v596_v50 = vperm.slane %v588_v46, %v2323_v24 }
 0x14c   : > { %v899_v48 = vsel %vm585_vm1, %v881_v27, %v898_v41  ;;  %v586_v49 = vsel %vm585_vm1, %v584_v42, %v2312_v10 }
 0x14d   : > { %v907_v51 = vperm.slane %v899_v48, %v2323_v24  ;;  %v908_v52 = vrot.slane %v903_v45, 4  ;;  %v911_v53 = vsel %vm585_vm1, %v903_v45, %v910_v43  ;;  %v592_v54 = vperm.slane %v586_v49, %v2323_v24 }
 0x14e   : > { %v919_v58 = vperm.slane %v911_v53, %v2340_v44  ;;  %v623_v0 = vrot.slane %v596_v50, 4  ;;  %v622_v3 = vsel %vm585_vm1, %v621_v56, %v596_v50 }
 0x14f   : > { %v909_v57 = vsel %vm585_vm1, %v908_v52, %v891_v29  ;;  %v920_v59 = vrot.slane %v907_v51, 4  ;;  %v923_v60 = vsel %vm585_vm1, %v907_v51, %v922_v47  ;;  %v610_v62 = vsel %vm585_vm1, %v609_v55, %v592_v54 }
 0x150   : > { %v931_v61 = vperm.slane %v923_v60, %v2340_v44  ;;  %v611_v63 = vrot.slane %v592_v54, 4  ;;  %v915_v2 = vperm.slane %v909_v57, %v2340_v44  ;;  %v934_v4 = vrot.slane %v919_v58, 4 }
 0x151   : > { %v921_v1 = vsel %vm585_vm1, %v920_v59, %v895_v33  ;;  %v616_v7 = vperm.slane %v610_v62, %v2340_v44  ;;  %v624_v11 = vsel %vm585_vm1, %v608_v39, %v623_v0  ;;  %v628_v13 = vperm.slane %v622_v3, %v2340_v44 }
 0x152   : > { %v612_v6 = vsel %vm585_vm1, %v604_v35, %v611_v63  ;;  %v927_v8 = vperm.slane %v921_v1, %v2340_v44  ;;  %v938_v9 = vrot.slane %v931_v61, 4  ;;  %v932_v14 = vrot.slane %v915_v2, 4 }
 0x153   : > { %v620_v12 = vperm.slane %v612_v6, %v2340_v44  ;;  %v935_v15 = vsel %vm585_vm1, 0.0, %v934_v4  ;;  %v633_v16 = vrot.slane %v616_v7, 4  ;;  %v632_v18 = vperm.slane %v624_v11, %v2340_v44 }
 0x154   : > { %v936_v21 = vrot.slane %v927_v8, 4  ;;  %v939_v22 = vsel %vm585_vm1, 0.0, %v938_v9  ;;  %v940_v23 = vsel %vm585_vm1, %v934_v4, %v915_v2  ;;  %v637_v27 = vrot.slane %v628_v13, 4 }
 0x155   : > { %v635_v17 = vrot.slane %v620_v12, 4  ;;  %v639_v28 = vrot.slane %v632_v18, 4  ;;  %v933_v29 = vsel %vm585_vm1, 0.0, %v932_v14  ;;  %v945_v30 = vrot.slane %v935_v15, 4 }
 0x156   : > { %v956_v33 = vrot.slane %v939_v22, 4  ;;  %v634_v34 = vsel %vm585_vm1, 0.0, %v633_v16  ;;  %v937_v42 = vsel %vm585_vm1, 0.0, %v936_v21  ;;  %v638_v45 = vsel %vm585_vm1, 0.0, %v637_v27 }
 0x157   : > { %v636_v25 = vsel %vm585_vm1, 0.0, %v635_v17  ;;  %v641_v26 = vsel %vm585_vm1, %v635_v17, %v616_v7  ;;  %v640_v35 = vsel %vm585_vm1, 0.0, %v639_v28  ;;  %v652_v36 = vsel %vm585_vm1, %v639_v28, %v628_v13 }
 0x158   : > { %v645_v31 = vperm.slane %v641_v26, %v2323_v24  ;;  %v646_v32 = vrot.slane %v636_v25, 4  ;;  %v656_v40 = vperm.slane %v652_v36, %v2323_v24  ;;  %v657_v41 = vrot.slane %v640_v35, 4 }
 0x159   : > { %v944_v46 = vperm.slane %v940_v23, %v2323_v24  ;;  %v946_v47 = vsel %vm585_vm1, %v945_v30, %v933_v29  ;;  %v951_v50 = vsel %vm585_vm1, %v938_v9, %v927_v8  ;;  %v957_v54 = vsel %vm585_vm1, %v956_v33, %v937_v42 }
 0x15a   : > { %v647_v38 = vsel %vm585_vm1, %v646_v32, %v634_v34  ;;  %v665_v39 = vrot.slane %v645_v31, 4  ;;  %v658_v48 = vsel %vm585_vm1, %v657_v41, %v638_v45  ;;  %v677_v49 = vrot.slane %v656_v40, 4 }
 0x15b   : > { %v651_v43 = vperm.slane %v647_v38, %v2323_v24  ;;  %v662_v53 = vperm.slane %v658_v48, %v2323_v24  ;;  %v950_v56 = vperm.slane %v946_v47, %v2323_v24  ;;  %v955_v60 = vperm.slane %v951_v50, %v2323_v24 }
 0x15c   : > { %v964_v0 = vrot.slane %v944_v46, 4  ;;  %v961_v2 = vperm.slane %v957_v54, %v2323_v24 }
 0x15d   : > { %v663_v51 = vrot.slane %v651_v43, 4  ;;  %v666_v52 = vsel %vm585_vm1, %v651_v43, %v665_v39  ;;  %v675_v58 = vrot.slane %v662_v53, 4  ;;  %v678_v59 = vsel %vm585_vm1, %v662_v53, %v677_v49  ;;  %v1002_v53 = vld [vmem:[#allocation9] sm:$0xf] }
 0x15e   : > { %v674_v55 = vperm.slane %v666_v52, %v2340_v44  ;;  %v686_v63 = vperm.slane %v678_v59, %v2340_v44  ;;  %v962_v9 = vrot.slane %v950_v56, 4  ;;  %v976_v14 = vrot.slane %v955_v60, 4 }
 0x15f   : > { %v664_v57 = vsel %vm585_vm1, %v663_v51, %v645_v31  ;;  %v676_v1 = vsel %vm585_vm1, %v675_v58, %v656_v40  ;;  %v965_v17 = vsel %vm585_vm1, %v950_v56, %v964_v0  ;;  %v974_v18 = vrot.slane %v961_v2, 4 }
 0x160   : > { %v670_v61 = vperm.slane %v664_v57, %v2340_v44  ;;  %v693_v62 = vrot.slane %v674_v55, 4  ;;  %v682_v4 = vperm.slane %v676_v1, %v2340_v44  ;;  %v691_v6 = vrot.slane %v686_v63, 4 }
 0x161   : > { %v963_v23 = vsel %vm585_vm1, %v962_v9, %v944_v46  ;;  %v973_v25 = vperm.slane %v965_v17, %v2340_v44  ;;  %v977_v26 = vsel %vm585_vm1, %v961_v2, %v976_v14  ;;  %v975_v27 = vsel %vm585_vm1, %v974_v18, %v955_v60 }
 0x162   : > { %v689_v3 = vrot.slane %v670_v61, 4  ;;  %v694_v7 = vsel %vm585_vm1, %v686_v63, %v693_v62  ;;  %v687_v11 = vrot.slane %v682_v4, 4  ;;  %v692_v13 = vsel %vm585_vm1, %v691_v6, %v674_v55 }
 0x163   : > { %v698_v8 = vpack.c.bf16 %v694_v7, %v694_v7  ;;  %v697_v16 = vpack.c.bf16 %v692_v13, %v692_v13  ;;  %v969_v28 = vperm.slane %v963_v23, %v2340_v44  ;;  %v985_v29 = vperm.slane %v977_v26, %v2340_v44 }
 0x164   : > { %v690_v12 = vsel %vm585_vm1, %v682_v4, %v689_v3  ;;  %v688_v21 = vsel %vm585_vm1, %v687_v11, %v670_v61  ;;  %v981_v31 = vperm.slane %v975_v27, %v2340_v44  ;;  %v992_v32 = vrot.slane %v973_v25, 4 }
 0x165   : > { %v696_v15 = vpack.c.bf16 %v690_v12, %v690_v12  ;;  %703 = vst.msk [vmem:[#allocation2 + $0xc] sm:$0xf] %vm699_vm2, %v698_v8  ;;  %v695_v22 = vpack.c.bf16 %v688_v21, %v688_v21  ;;  %v988_v35 = vrot.slane %v969_v28, 4  ;;  %v990_v39 = vrot.slane %v985_v29, 4 }
 0x166   : > { %702 = vst.msk [vmem:[#allocation2 + $0x8] sm:$0xf] %vm699_vm2, %v697_v16  ;;  %v986_v42 = vrot.slane %v981_v31, 4  ;;  %v993_v43 = vsel %vm585_vm1, %v985_v29, %v992_v32  ;;  %v1003_v54 = vunpack.c.l.bf16 %v1002_v53  ;;  %v1763_v8 = vpack.i.bf16 %v2319_v20, %v2312_v10 }
 0x167   : > { %701 = vst.msk [vmem:[#allocation2 + $0x4] sm:$0xf] %vm699_vm2, %v696_v15  ;;  %v989_v46 = vsel %vm585_vm1, %v981_v31, %v988_v35  ;;  %v991_v47 = vsel %vm585_vm1, %v990_v39, %v973_v25  ;;  %v997_v48 = vpack.c.bf16 %v993_v43, %v993_v43  ;;  %v1768_v9 = vpack.i.bf16 %v2317_v19, %v2334_v37 }
 0x168   : > { %700 = vst.msk [vmem:[#allocation2] sm:$0xf] %vm699_vm2, %v695_v22  ;;  %v987_v49 = vsel %vm585_vm1, %v986_v42, %v969_v28  ;;  %v995_v50 = vpack.c.bf16 %v989_v46, %v989_v46  ;;  %v996_v51 = vpack.c.bf16 %v991_v47, %v991_v47 }
 0x169   : > { %v994_v52 = vpack.c.bf16 %v987_v49, %v987_v49 }
 0x16c   : > { %v1001_v30 = vld [vmem:[#allocation2 + $0xc] sm:$0xf] }
 0x16d   : > { %v1066_v33 = vsel %vm1004_vm3, %v1001_v30, 0  ;;  %v1000_v36 = vld [vmem:[#allocation2 + $0x8] sm:$0xf] }
 0x16e   : > { %1075 = vmatpush.bf16.xpose.msrb.mxu1 %v1066_v33  ;;  %v999_v34 = vld [vmem:[#allocation2 + $0x4] sm:$0xf]  ;;  %v1047_v40 = vsel %vm1004_vm3, %v1000_v36, 0 }
 0x16f   : > { %v1028_v38 = vsel %vm1004_vm3, %v999_v34, 0  ;;  %v998_v41 = vld [vmem:[#allocation2] sm:$0xf]  ;;  %1056 = vmatpush.bf16.xpose.msrb.mxu0 %v1047_v40 }
 0x170   : > { %1037 = vmatpush.bf16.xpose.msra.mxu3 %v1028_v38  ;;  %v1009_v45 = vsel %vm1004_vm3, %v998_v41, 0 }
 0x171   : > { %1018 = vmatpush.bf16.xpose.msra.mxu2 %v1009_v45 }
 0x175   : > { %1619 = vmatmul.msk.bf16.vlgmr.msrb.gmra.mxu1 %vm1004_vm3, %v997_v48 }
 0x176   : > { %1618 = vmatmul.msk.bf16.vlgmr.msrb.gmra.mxu0 %vm1004_vm3, %v996_v51 }
 0x177   : > { %1617 = vmatmul.msk.bf16.vlgmr.msra.gmra.mxu3 %vm1004_vm3, %v995_v50 }
 0x178   : > { %1616 = vmatmul.msk.bf16.vlgmr.msra.gmra.mxu2 %vm1004_vm3, %v994_v52 }
 0x1f2   : > { %v1077_v55 = vpop.f32.mrf.mxu1 }
 0x1f3   : > { %v1058_v56 = vpop.f32.mrf.mxu0  ;;  %v1078_v62 = vadd.f32 %v1077_v55, %v1003_v54 }
 0x1f4   : > { %v1059_v57 = vadd.f32 %v1058_v56, %v1003_v54 }
 0x1f5   : > { %v1090_v4 = vsel %vm1004_vm3, %v1078_v62, -inf }
 0x1f6   : > { %v1087_v58 = vsel %vm1004_vm3, %v1059_v57, -inf }
 0x1f7   : > { %1088 = vmax.xlane.f32.xlu2 %v1087_v58 }
 0x1fa   : > { %v1039_v59 = vpop.f32.mrf.mxu3  ;;  %v1079_v60 = vpop.f32.mrf.mxu1 }
 0x1fb   : > { %v1040_v61 = vadd.f32 %v1039_v59, %v1003_v54  ;;  %v1020_v63 = vpop.f32.mrf.mxu2  ;;  %v1060_v1 = vpop.f32.mrf.mxu0 }
 0x1fc   : > { %v1021_v0 = vadd.f32 %v1020_v63, %v1003_v54 }
 0x1fd   : > { %v1084_v2 = vsel %vm1004_vm3, %v1040_v61, -inf }
 0x1fe   : > { %1085 = vmax.xlane.f32.xlu1 %v1084_v2  ;;  %v1081_v3 = vsel %vm1004_vm3, %v1021_v0, -inf }
 0x1ff   : > { %1082 = vmax.xlane.f32.xlu0 %v1081_v3  ;;  %1091 = vmax.xlane.f32.xlu2 %v1090_v4 }
 0x202   : > { %v1041_v6 = vpop.f32.mrf.mxu3 }
 0x203   : > { %v1022_v7 = vpop.f32.mrf.mxu2 }
 0x213   : > { %1764 = vrot.lane.b32.xlu0 %v1763_v8, %s2089_s26 }
 0x217   : > { %1769 = vrot.lane.b32.xlu1 %v1768_v9, %s2089_s26  ;;  %s1992_s26 = sshra.s32 %s1435_s25, 4  ;;  %s1993_s26 = int_to_ptr.hbm [resolvable:$true] %s1992_s26 }
 0x218   : > { %p1999_p10 = scmp.lt.s32.totalorder %s1993_s26, %s2638_s23 }
 0x26a   : > { %v1089_v11 = vpop.xlane.xlu2 %1088 }
 0x26b   : > { %v1095_v12 = vsub.f32 %v1059_v57, %v1089_v11 }
 0x26d   : > { %v1101_v13 = vmul.f32 1.442695, %v1095_v12 }
 0x26f   : > { %1778 = vpow2.f32 %v1101_v13 }
 0x271   : > { %v1086_v15 = vpop.xlane.xlu1 %1085 }
 0x272   : > { %v1083_v14 = vpop.xlane.xlu0 %1082  ;;  %v1094_v18 = vsub.f32 %v1040_v61, %v1086_v15  ;;  %v1092_v20 = vpop.xlane.xlu2 %1091 }
 0x273   : > { %v1093_v16 = vsub.f32 %v1021_v0, %v1083_v14  ;;  %v1096_v19 = vsub.f32 %v1078_v62, %v1092_v20 }
 0x274   : > { %v1099_v22 = vmul.f32 1.442695, %v1094_v18 }
 0x275   : > { %v1097_v17 = vmul.f32 1.442695, %v1093_v16  ;;  %v2435_v21 = vpop.eup %1778  ;;  %v1103_v25 = vmul.f32 1.442695, %v1096_v19 }
 0x276   : > { %v1111_v10 = vsel %vm1004_vm3, %v2435_v21, 0.0 }
 0x277   : > { %1780 = vpow2.f32 %v1097_v17  ;;  %1112 = vadd.xlane.f32.xlu0 %v1111_v10 }
 0x278   : > { %1782 = vpow2.f32 %v1099_v22 }
 0x279   : > { %1784 = vpow2.f32 %v1103_v25 }
 0x27d   : > { %v2439_v37 = vpop.eup %1780 }
 0x27e   : > { %v1105_v23 = vsel %vm1004_vm3, %v2439_v37, 0.0  ;;  %v2443_v26 = vpop.eup %1782 }
 0x27f   : > { %1106 = vadd.xlane.f32.xlu2 %v1105_v23  ;;  %v1108_v30 = vsel %vm1004_vm3, %v2443_v26, 0.0  ;;  %v2447_v36 = vpop.eup %1784 }
 0x280   : > { %v1114_v47 = vsel %vm1004_vm3, %v2447_v36, 0.0 }
 0x285   : > { %v1765_v27 = vpop.permute.xlu0 %1764 }
 0x286   : > { %v1767_v28 = vunpack.i.h.bf16 %v1765_v27  ;;  %v1766_v29 = vunpack.i.l.bf16 %v1765_v27 }
 0x287   : > { %1109 = vadd.xlane.f32.xlu2 %v1108_v30 }
 0x288   : > { %v730_v32 = vrot.slane %v1767_v28, 4  ;;  %v718_v33 = vrot.slane %v1766_v29, 4 }
 0x289   : > { %v1770_v31 = vpop.permute.xlu1 %1769 }
 0x28a   : > { %v1772_v34 = vunpack.i.h.bf16 %v1770_v31  ;;  %v1771_v35 = vunpack.i.l.bf16 %v1770_v31 }
 0x28c   : > { %v728_v38 = vrot.slane %v1772_v34, 4  ;;  %v716_v39 = vrot.slane %v1771_v35, 4  ;;  %v719_v40 = vsel %vm585_vm1, %v1771_v35, %v718_v33  ;;  %v731_v41 = vsel %vm585_vm1, %v1772_v34, %v730_v32 }
 0x28d   : > { %v727_v42 = vperm.slane %v719_v40, %v2323_v24  ;;  %v739_v43 = vperm.slane %v731_v41, %v2323_v24 }
 0x28e   : > { %v717_v45 = vsel %vm585_vm1, %v716_v39, %v1766_v29  ;;  %v729_v46 = vsel %vm585_vm1, %v728_v38, %v1767_v28 }
 0x28f   : > { %v723_v48 = vperm.slane %v717_v45, %v2323_v24  ;;  %v735_v49 = vperm.slane %v729_v46, %v2323_v24  ;;  %v752_v50 = vrot.slane %v739_v43, 4  ;;  %v754_v51 = vrot.slane %v727_v42, 4  ;;  %1115 = vadd.xlane.f32.xlu2 %v1114_v47 }
 0x291   : > { %v740_v52 = vrot.slane %v735_v49, 4  ;;  %v742_v53 = vrot.slane %v723_v48, 4  ;;  %v753_v54 = vsel %vm585_vm1, %v752_v50, %v727_v42  ;;  %v755_v55 = vsel %vm585_vm1, %v739_v43, %v754_v51 }
 0x292   : > { %v759_v56 = vperm.slane %v753_v54, %v2340_v44  ;;  %v763_v57 = vperm.slane %v755_v55, %v2340_v44 }
 0x293   : > { %v741_v58 = vsel %vm585_vm1, %v740_v52, %v723_v48  ;;  %v743_v59 = vsel %vm585_vm1, %v735_v49, %v742_v53 }
 0x294   : > { %v747_v60 = vperm.slane %v741_v58, %v2340_v44  ;;  %v751_v61 = vperm.slane %v743_v59, %v2340_v44  ;;  %v768_v62 = vrot.slane %v759_v56, 4  ;;  %v770_v63 = vrot.slane %v763_v57, 4 }
 0x296   : > { %v764_v0 = vrot.slane %v747_v60, 4  ;;  %v766_v1 = vrot.slane %v751_v61, 4  ;;  %v771_v2 = vsel %vm585_vm1, 0.0, %v770_v63  ;;  %v783_v3 = vsel %vm585_vm1, %v770_v63, %v759_v56 }
 0x297   : > { %v788_v4 = vrot.slane %v771_v2, 4  ;;  %v769_v7 = vsel %vm585_vm1, 0.0, %v768_v62  ;;  %v787_v9 = vperm.slane %v783_v3, %v2323_v24 }
 0x298   : > { %v767_v6 = vsel %vm585_vm1, 0.0, %v766_v1  ;;  %v772_v8 = vsel %vm585_vm1, %v766_v1, %v747_v60  ;;  %v765_v14 = vsel %vm585_vm1, 0.0, %v764_v0 }
 0x299   : > { %v776_v11 = vperm.slane %v772_v8, %v2323_v24  ;;  %v777_v12 = vrot.slane %v767_v6, 4  ;;  %v789_v13 = vsel %vm585_vm1, %v788_v4, %v769_v7  ;;  %v808_v16 = vrot.slane %v787_v9, 4 }
 0x29a   : > { %v793_v15 = vperm.slane %v789_v13, %v2323_v24 }
 0x29b   : > { %v778_v17 = vsel %vm585_vm1, %v777_v12, %v765_v14  ;;  %v796_v18 = vrot.slane %v776_v11, 4 }
 0x29c   : > { %v782_v10 = vperm.slane %v778_v17, %v2323_v24  ;;  %v806_v20 = vrot.slane %v793_v15, 4  ;;  %v809_v22 = vsel %vm585_vm1, %v793_v15, %v808_v16 }
 0x29d   : > { %v817_v19 = vperm.slane %v809_v22, %v2340_v44 }
 0x29e   : > { %v794_v23 = vrot.slane %v782_v10, 4  ;;  %v797_v25 = vsel %vm585_vm1, %v782_v10, %v796_v18  ;;  %v807_v27 = vsel %vm585_vm1, %v806_v20, %v787_v9 }
 0x29f   : > { %v805_v28 = vperm.slane %v797_v25, %v2340_v44  ;;  %v813_v29 = vperm.slane %v807_v27, %v2340_v44  ;;  %v822_v30 = vrot.slane %v817_v19, 4 }
 0x2a0   : > { %v795_v31 = vsel %vm585_vm1, %v794_v23, %v776_v11 }
 0x2a1   : > { %v801_v32 = vperm.slane %v795_v31, %v2340_v44  ;;  %v818_v33 = vrot.slane %v813_v29, 4  ;;  %v823_v34 = vsel %vm585_vm1, %v822_v30, %v805_v28  ;;  %v824_v35 = vrot.slane %v805_v28, 4 }
 0x2a2   : > { %v828_v38 = vpack.c.bf16 %v823_v34, %v823_v34 }
 0x2a3   : > { %v819_v39 = vsel %vm585_vm1, %v818_v33, %v801_v32  ;;  %v820_v40 = vrot.slane %v801_v32, 4  ;;  %v825_v41 = vsel %vm585_vm1, %v817_v19, %v824_v35 }
 0x2a4   : > { %v826_v42 = vpack.c.bf16 %v819_v39, %v819_v39  ;;  %v829_v43 = vpack.c.bf16 %v825_v41, %v825_v41  ;;  %832 = vst.msk [vmem:[#allocation3 + $0x8] sm:$0xf] %vm699_vm2, %v828_v38 }
 0x2a5   : > { %v821_v45 = vsel %vm585_vm1, %v813_v29, %v820_v40 }
 0x2a6   : > { %v827_v46 = vpack.c.bf16 %v821_v45, %v821_v45  ;;  %833 = vst.msk [vmem:[#allocation3 + $0xc] sm:$0xf] %vm699_vm2, %v829_v43 }
 0x2a7   : > { %830 = vst.msk [vmem:[#allocation3] sm:$0xf] %vm699_vm2, %v826_v42 }
 0x2a8   : > { %831 = vst.msk [vmem:[#allocation3 + $0x4] sm:$0xf] %vm699_vm2, %v827_v46 }
 0x2ab   : > { %v1131_v47 = vld [vmem:[#allocation3 + $0x8] sm:$0xf] }
 0x2ac   : > { %v1176_v48 = vsel %vm1136_vm4, %v1131_v47, 0 }
 0x2ad   : > { %1185 = vmatpush.bf16.msra.mxu0 %v1176_v48  ;;  %v1132_v49 = vld [vmem:[#allocation3 + $0xc] sm:$0xf] }
 0x2ae   : > { %v1129_v50 = vld [vmem:[#allocation3] sm:$0xf]  ;;  %v1195_v51 = vsel %vm1136_vm4, %v1132_v49, 0 }
 0x2af   : > { %v1138_v52 = vsel %vm1136_vm4, %v1129_v50, 0  ;;  %1204 = vmatpush.bf16.msra.mxu1 %v1195_v51  ;;  %v1130_v53 = vld [vmem:[#allocation3 + $0x4] sm:$0xf] }
 0x2b0   : > { %1147 = vmatpush.bf16.msrb.mxu2 %v1138_v52  ;;  %v1157_v54 = vsel %vm1136_vm4, %v1130_v53, 0 }
 0x2b1   : > { %1166 = vmatpush.bf16.msrb.mxu3 %v1157_v54 }
 0x2ea   : > { %v1113_v55 = vpop.xlane.xlu0 %1112 }
 0x2eb   : > { %1786 = vrcp.f32 %v1113_v55 }
 0x2f1   : > { %v1787_v56 = vpop.eup %1786 }
 0x2f2   : > { %v1107_v57 = vpop.xlane.xlu2 %1106  ;;  %v1123_v58 = vmul.f32 %v1787_v56, %v2435_v21 }
 0x2f3   : > { %1788 = vrcp.f32 %v1107_v57 }
 0x2f4   : > { %v1127_v59 = vpack.c.bf16 %v1123_v58, %v1123_v58 }
 0x2f6   : > { %1622 = vmatmul.msk.bf16.vlgmr.msra.gmra.mxu0 %vm1004_vm3, %v1127_v59 }
 0x2f9   : > { %v1789_v60 = vpop.eup %1788 }
 0x2fa   : > { %v1121_v61 = vmul.f32 %v1789_v60, %v2439_v37  ;;  %v1110_v62 = vpop.xlane.xlu2 %1109 }
 0x2fb   : > { %1790 = vrcp.f32 %v1110_v62 }
 0x2fc   : > { %v1125_v63 = vpack.c.bf16 %v1121_v61, %v1121_v61 }
 0x2fe   : > { %1620 = vmatmul.msk.bf16.vlgmr.msrb.gmra.mxu2 %vm1004_vm3, %v1125_v63 }
 0x301   : > { %v1791_v0 = vpop.eup %1790 }
 0x302   : > { %v1122_v1 = vmul.f32 %v1791_v0, %v2443_v26  ;;  %v1116_v2 = vpop.xlane.xlu2 %1115 }
 0x303   : > { %1792 = vrcp.f32 %v1116_v2 }
 0x304   : > { %v1126_v3 = vpack.c.bf16 %v1122_v1, %v1122_v1 }
 0x306   : > { %1621 = vmatmul.msk.bf16.vlgmr.msrb.gmra.mxu3 %vm1004_vm3, %v1126_v3 }
 0x309   : > { %v1793_v21 = vpop.eup %1792 }
 0x30a   : > { %v1124_v4 = vmul.f32 %v1793_v21, %v2447_v36 }
 0x30c   : > { %v1128_v6 = vpack.c.bf16 %v1124_v4, %v1124_v4 }
 0x30e   : > { %1623 = vmatmul.msk.bf16.vlgmr.msra.gmra.mxu1 %vm1004_vm3, %v1128_v6 }
 0x373   : > { %v1187_v37 = vpop.f32.mrf.mxu0 }
 0x374   : > { %v1210_v11 = vrot.slane %v1187_v37, 4 }
 0x37b   : > { %v1189_v7 = vpop.f32.mrf.mxu0 }
 0x381   : > { %v1149_v8 = vpop.f32.mrf.mxu2 }
 0x382   : > { %v1212_v9 = vrot.slane %v1149_v8, 4  ;;  %v1211_v26 = vsel %vm585_vm1, %v1210_v11, %v1149_v8 }
 0x383   : > { %v1217_v17 = vperm.slane %v1211_v26, %v2323_v24 }
 0x384   : > { %v1213_v12 = vsel %vm585_vm1, %v1187_v37, %v1212_v9 }
 0x385   : > { %v1221_v13 = vperm.slane %v1213_v12, %v2323_v24  ;;  %v1236_v23 = vrot.slane %v1217_v17, 4 }
 0x387   : > { %v1248_v20 = vrot.slane %v1221_v13, 4 }
 0x389   : > { %v1151_v14 = vpop.f32.mrf.mxu2  ;;  %v1168_v15 = vpop.f32.mrf.mxu3 }
 0x38a   : > { %v1224_v16 = vrot.slane %v1168_v15, 4  ;;  %v1642_v14 = vld [vmem:[#allocation13 + $0x8] sm:$0xff] }
 0x38b   : > { %v1206_v36 = vpop.f32.mrf.mxu1  ;;  %1367 = vmatpush.bf16.msra.mxu2 %v1642_v14 }
 0x38c   : > { %v1222_v18 = vrot.slane %v1206_v36, 4  ;;  %v1225_v10 = vsel %vm585_vm1, %v1206_v36, %v1224_v16 }
 0x38d   : > { %v1233_v22 = vperm.slane %v1225_v10, %v2323_v24 }
 0x38e   : > { %v1223_v19 = vsel %vm585_vm1, %v1222_v18, %v1168_v15  ;;  %v1641_v15 = vld [vmem:[#allocation13] sm:$0xff] }
 0x38f   : > { %v1229_v25 = vperm.slane %v1223_v19, %v2323_v24  ;;  %v1246_v27 = vrot.slane %v1233_v22, 4  ;;  %v1249_v28 = vsel %vm585_vm1, %v1233_v22, %v1248_v20  ;;  %1368 = vmatpush.bf16.msra.mxu2 %v1641_v15  ;;  %v1775_v22 = vld [vmem:[%s2604_s8] ss:$0 sm:$0xff]  ;;  %v1374_v19 = vunpack.c.l.bf16 %v2301_v5 }
 0x390   : > { %v1257_v29 = vperm.slane %v1249_v28, %v2340_v44 }
 0x391   : > { %v1234_v30 = vrot.slane %v1229_v25, 4  ;;  %v1237_v31 = vsel %vm585_vm1, %v1229_v25, %v1236_v23  ;;  %v1247_v32 = vsel %vm585_vm1, %v1246_v27, %v1221_v13  ;;  %v1170_v33 = vpop.f32.mrf.mxu3 }
 0x392   : > { %v1245_v34 = vperm.slane %v1237_v31, %v2340_v44  ;;  %v1253_v35 = vperm.slane %v1247_v32, %v2340_v44  ;;  %v1264_v38 = vrot.slane %v1257_v29, 4 }
 0x393   : > { %v1235_v39 = vsel %vm585_vm1, %v1234_v30, %v1217_v17  ;;  %v1208_v40 = vpop.f32.mrf.mxu1  ;;  %v2093_v30 = vmov 32.0  }
 0x394   : > { %v1241_v41 = vperm.slane %v1235_v39, %v2340_v44  ;;  %v1260_v42 = vrot.slane %v1245_v34, 4  ;;  %v1262_v43 = vrot.slane %v1253_v35, 4  ;;  %v1265_v45 = vsel %vm585_vm1, 0.0, %v1264_v38 }
 0x395   : > { %v1277_v46 = vsel %vm585_vm1, %v1264_v38, %v1253_v35  ;;  %v1282_v47 = vrot.slane %v1265_v45, 4  ;;  %1794 = vrcp.f32 %v2093_v30 }
 0x396   : > { %v1258_v48 = vrot.slane %v1241_v41, 4  ;;  %v1261_v49 = vsel %vm585_vm1, 0.0, %v1260_v42  ;;  %v1263_v50 = vsel %vm585_vm1, 0.0, %v1262_v43  ;;  %v1281_v51 = vperm.slane %v1277_v46, %v2323_v24 }
 0x397   : > { %v1271_v52 = vrot.slane %v1261_v49, 4  ;;  %v1266_v53 = vsel %vm585_vm1, %v1260_v42, %v1241_v41  ;;  %v1283_v54 = vsel %vm585_vm1, %v1282_v47, %v1263_v50 }
 0x398   : > { %v1259_v55 = vsel %vm585_vm1, 0.0, %v1258_v48  ;;  %v1270_v56 = vperm.slane %v1266_v53, %v2323_v24  ;;  %v1287_v57 = vperm.slane %v1283_v54, %v2323_v24  ;;  %v1302_v58 = vrot.slane %v1281_v51, 4  ;;  %v1776_v53 = vld [vmem:[%s2605_s9] ss:$0 sm:$0xff] }
 0x399   : > { %v1272_v59 = vsel %vm585_vm1, %v1271_v52, %v1259_v55  ;;  %v1777_v55 = vld [vmem:[%s2606_s10] ss:$0 sm:$0xff] }
 0x39a   : > { %v1276_v60 = vperm.slane %v1272_v59, %v2323_v24  ;;  %v1290_v61 = vrot.slane %v1270_v56, 4  ;;  %v1303_v62 = vsel %vm585_vm1, %v1287_v57, %v1302_v58  ;;  %v1300_v63 = vrot.slane %v1287_v57, 4 }
 0x39b   : > { %v1311_v0 = vperm.slane %v1303_v62, %v2340_v44  ;;  %v1795_v31 = vpop.eup %1794 }
 0x39c   : > { %v1291_v1 = vsel %vm585_vm1, %v1276_v60, %v1290_v61  ;;  %v1288_v2 = vrot.slane %v1276_v60, 4  ;;  %v1301_v3 = vsel %vm585_vm1, %v1300_v63, %v1281_v51  ;;  %v1382_v32 = vmul.f32 32.0, %v1795_v31 }
 0x39d   : > { %v1299_v21 = vperm.slane %v1291_v1, %v2340_v44  ;;  %v1316_v4 = vrot.slane %v1311_v0, 4  ;;  %v1307_v6 = vperm.slane %v1301_v3, %v2340_v44  ;;  %vm1386_vm7 = vweird.f32 %v1795_v31 }
 0x39e   : > { %v1289_v37 = vsel %vm585_vm1, %v1288_v2, %v1270_v56  ;;  %v1383_v33 = vsub.f32 1.0, %v1382_v32 }
 0x39f   : > { %v1317_v24 = vsel %vm585_vm1, %v1316_v4, %v1299_v21  ;;  %v1295_v7 = vperm.slane %v1289_v37, %v2340_v44  ;;  %v1312_v8 = vrot.slane %v1307_v6, 4  ;;  %v1318_v26 = vrot.slane %v1299_v21, 4 }
 0x3a0   : > { %1325 = vrot.lane.b32.xlu2 %v1317_v24, %s2090_s29  ;;  %v1384_v34 = vmul.f32 %v1795_v31, %v1383_v33  ;;  %s1994_s29 = scalar_lea.hbm %s1993_s26, 4 }
 0x3a1   : > { %v1314_v9 = vrot.slane %v1295_v7, 4  ;;  %v1313_v11 = vsel %vm585_vm1, %v1312_v8, %v1295_v7  ;;  %v1319_v13 = vsel %vm585_vm1, %v1311_v0, %v1318_v26  ;;  %p1995_p1 = scmp.ne.s32.totalorder %s1993_s26, %s1994_s29  ;;  %p2000_p11 = scmp.lt.s32.totalorder %s1998_s30, %s1994_s29 }
 0x3a2   : > { %v1385_v35 = vadd.f32 %v1795_v31, %v1384_v34 }
 0x3a3   : > { %v1315_v12 = vsel %vm585_vm1, %v1307_v6, %v1314_v9  ;;  %p1996_p3 = pnand %p1995_p1, %p2246_p2  ;;  %p2001_p12 = por %p2000_p11, %p1999_p10 }
 0x3a4   : > { %1321 = vrot.lane.b32.xlu1 %v1315_v12, %s2091_s13  ;;  %v1387_v38 = vsel %vm1386_vm7, %v1795_v31, %v1385_v35 }
 0x3a5   : > { %p1997_p9 = pneg %p1996_p3 }
 0x3a7   : > { %p2002_p13 = pnand %p2001_p12, %p1997_p9 }
 0x3ac   : > { %1329 = vrot.lane.b32.xlu1 %v1319_v13, %s2092_s14 }
 0x3fa   : > { %v1326_v17 = vpop.permute.xlu2 %1325 }
 0x416   : > { %v1322_v44 = vpop.permute.xlu1 %1321 }
 0x417   : > { %v1332_v16 = vsel %vm1004_vm3, %v1313_v11, %v1322_v44 }
 0x418   : > { %v1334_v18 = vsel %vm1333_vm5, %v1332_v16, %v1326_v17 }
 0x41e   : > { %v1330_v36 = vpop.permute.xlu1 %1329 }
 0x41f   : > { %v1336_v10 = vsel %vm1335_vm6, %v1334_v18, %v1330_v36 }
 0x420   : > { %v1337_v20 = vpack.c.bf16 %v1336_v10, %v1336_v10 }
 0x422   : > { %1632 = vmatmul.msk.bf16.vlgmr.msra.gmra.mxu2 %vm557_vm0, %v1337_v20 }
 0x4a5   : > { %v1370_v23 = vpop.f32.mrf.mxu2 }
 0x4a6   : > { %v1371_v25 = vadd.f32 %v1775_v22, %v1370_v23 }
 0x4a8   : > { %v1375_v27 = vadd.f32 %v1374_v19, %v1371_v25 }
 0x4aa   : > { %v1378_v28 = vsel %vm557_vm0, %v1375_v27, 0.0 }
 0x4ab   : > { %1379 = vadd.xlane.f32.xlu1 %v1378_v28 }
 0x4ad   : > { %v1372_v29 = vpop.f32.mrf.mxu2 }
 0x51e   : > { %v1380_v39 = vpop.xlane.xlu1 %1379 }
 0x51f   : > { %v1388_v40 = vmul.f32 %v1387_v38, %v1380_v39 }
 0x521   : > { %v1389_v41 = vsub.f32 %v1375_v27, %v1388_v40 }
 0x523   : > { %v1390_v5 = vmul.f32 %v1389_v41, %v1389_v41 }
 0x525   : > { %v1391_v42 = vsel %vm557_vm0, %v1390_v5, 0.0 }
 0x526   : > { %1392 = vadd.xlane.f32.xlu2 %v1391_v42 }
 0x599   : > { %v1393_v43 = vpop.xlane.xlu2 %1392 }
 0x59a   : > { %v1394_v45 = vmul.f32 %v1393_v43, %v1387_v38 }
 0x59c   : > { %v1395_v46 = vadd.f32 1e-05, %v1394_v45 }
 0x59e   : > { %1796 = vrsqrt.f32 %v1395_v46  ;;  %vm1402_vm9 = vweird.f32 %v1395_v46 }
 0x5a4   : > { %v1797_v47 = vpop.eup %1796 }
 0x5a5   : > { %v1397_v48 = vmul.f32 %v1797_v47, %v1395_v46  ;;  %vm1403_vm8 = vweird.f32 %v1797_v47 }
 0x5a6   : > { %vm1404_vm10 = vmor %vm1402_vm9, %vm1403_vm8 }
 0x5a7   : > { %v1398_v49 = vmul.f32 %v1797_v47, %v1397_v48 }
 0x5a9   : > { %v1399_v50 = vmul.f32 0.5, %v1398_v49 }
 0x5ab   : > { %v1400_v51 = vsub.f32 1.5, %v1399_v50 }
 0x5ad   : > { %v1401_v52 = vmul.f32 %v1797_v47, %v1400_v51 }
 0x5af   : > { %v1405_v54 = vsel %vm1404_vm10, %v1797_v47, %v1401_v52 }
 0x5b0   : > { %v1406_v56 = vmul.f32 %v1405_v54, %v1389_v41 }
 0x5b2   : > { %v1410_v57 = vmul.f32 %v1776_v53, %v1406_v56 }
 0x5b4   : > { %v1414_v58 = vadd.f32 %v1777_v55, %v1410_v57 }
 0x5b6   : > { %v1415_v59 = vpack.c.bf16 %v1414_v58, %v1414_v58 }
 0x5b8   : > { %1417 = vst.msk [vmem:[%s530_s24] sm:$0xf] %vm1416_vm11, %v1415_v59 }
 0x5b9   : > { %2005 = shalt.err (!%p2002_p13)
}
 0x5ba   : > { %1663 = dma.vmem_to_hbm [thread:$0]  (%p2246_p2), %s1433_s20, 64, %s1435_s25, %s1419_s12  }
 0x5bb PF: > { %s2640_s5 = sld [smem:[#allocation22_spill]]  ;;  %p1686_p0 = pnand %p1585_p4, %p2253_p6 }
 0x5bd   : > { %p1687_p5 = pneg %p1686_p0 }
 0x5c1   : > { %s1446_s7 = sand.u32 1, %s2640_s5  }
 0x5c2   : > { %s1447_s17 = scalar_lea.sflag [#allocation6], %s1446_s7 }
 0x5c3   : > { %2051 = dma.done.wait (%p1687_p5), %s1447_s17, 64  }
 0x5c4   : > { %2053 = vsyncadd (%p1687_p5), %s1447_s17, 4294967232  ;;  %s32_s22 = sadd.s32 1, %s2076_s22   ;;  %s2642_s11 = sld [smem:[#allocation23_spill]] }
 0x5c5   : > { %p29_p7 = scmp.ge.s32.totalorder %s32_s22, 4   ;;  %s2643_s19 = sld [smem:[#allocation27_spill]] }
 0x5c6   : > { %s2644_s20 = sld [smem:[#allocation24_spill]]  ;;  %s2646_s17 = smov %s2060_s18 }
 0x5c7   : > { %s2645_s21 = sld [smem:[#allocation25_spill]]  ;;  %31 = sbr.rel (!%p29_p7) target bundleno = 16 (0x10), region = 143 }
 0x5ca   : > { %s2647_s18 = smov %s2642_s11 }
 0x5cc   :  { %1453 = vsyncpa [#allocation5], 1 }
 0x5cd   :  { %1455 = vsyncpa [#allocation5 + $0x1], 1 }
 0x5ce   :  { %1456 = vsyncpa [#allocation8], 1 }
 0x5cf   :  { %1458 = vsyncpa [#allocation8 + $0x1], 1 }
 0x5d0   :  { %1459 = vsyncpa [#allocation11], 1 }
 0x5d1   :  { %1460 = vsyncpa [#allocation14], 1 }
 0x5d2   :  { %1461 = vsyncpa [#allocation6], 1 }
 0x5d3   :  { %1463 = vsyncpa [#allocation6 + $0x1], 1 }

</bundles_post_ra>
